<compile_context>
chip_gen: v6e
topology: v6e:2x2x1
jax: 0.10.0
libtpu: 0.0.40
codegen_flags: <defaults>
</compile_context>

<pallas_src>
import jax
import jax.numpy as jnp
from jax import lax
from jax.experimental import pallas as pl
from jax.experimental.pallas import tpu as pltpu


def _lstm_kernel(x_ref, lens_ref, wih_ref, whh_ref, b_ref, wo_ref, bo_ref,
                 out_ref):
    T, BB = x_ref.shape              # time on sublanes, batch block on lanes
    H = whh_ref.shape[1]

    # Loop-invariant hoists (JAX does not CSE broadcast_in_dim -> keep these
    # out of the step body).
    wih_b = jnp.broadcast_to(wih_ref[...], (4 * H, BB))        # (4H, BB) f32
    bias_b = jnp.broadcast_to(b_ref[...], (4 * H, BB))         # (4H, BB) f32
    whh = whh_ref[...]                                         # (4H, H) bf16
    lens_m1 = jnp.broadcast_to(lens_ref[...] - 1, (H, BB))     # (H, BB) int32

    h0 = jnp.zeros((H, BB), jnp.float32)
    c0 = jnp.zeros((H, BB), jnp.float32)
    sel0 = jnp.zeros((H, BB), jnp.float32)

    def step(t, carry):
        h, c, sel = carry
        # In-loop input projection (I == 1): x[t] is one scalar per batch lane,
        # so this is a pure VPU broadcast-FMA that co-issues under MXU/EUP slack.
        x_t = x_ref[pl.ds(t, 1), :]                            # (1, BB) f32
        z = wih_b * x_t + bias_b                               # (4H, BB) f32
        # Only the recurrent matmul sits on the serial h->h critical path:
        # bf16 operands, f32 accumulation on the MXU.
        z = z + jnp.dot(whh, h.astype(jnp.bfloat16),
                        preferred_element_type=jnp.float32)    # (4H, BB) f32
        # One sigmoid over all four gates (gate order [i, f, g, o]); the g rows
        # were pre-scaled by 2, so tanh(z_g) == 2*sigmoid(2*z_g) - 1.
        sig = jax.nn.sigmoid(z)
        # Gates live on the sublane axis; H % 8 == 0 => whole-vreg slices.
        i_g = sig[0 * H:1 * H]
        f_g = sig[1 * H:2 * H]
        g_g = 2.0 * sig[2 * H:3 * H] - 1.0
        o_g = sig[3 * H:4 * H]
        c_new = f_g * c + i_g * g_g
        h_new = o_g * jnp.tanh(c_new)
        # hidden = lstm_out[arange(B), x_lens - 1]: latch h at step t == len-1.
        sel_new = jnp.where(lens_m1 == t, h_new, sel)
        return h_new, c_new, sel_new

    _, _, sel = lax.fori_loop(0, T, step, (h0, c0, sel0), unroll=min(T, 8))

    # Fused final Linear(H, 2): (2, H) @ (H, BB) + (2, 1), bf16 operands.
    out_ref[...] = (jnp.dot(wo_ref[...], sel.astype(jnp.bfloat16),
                            preferred_element_type=jnp.float32) + bo_ref[...])


def parity_lstm_forward(x, x_lens, params):
    """x: (B, T, 1) f32, x_lens: (B,) int. Returns (B, 2) f32."""
    B, T, I = x.shape
    assert I == 1
    H = params["w_hh"].shape[1]                      # w_hh: (4H, H)
    assert H % 8 == 0, "H must be a multiple of 8 for sublane-aligned gates"

    # PyTorch gate order is [i, f, g, o] along the 4H axis.  Pre-scale the
    # g-gate rows by 2 so the kernel needs only one sigmoid per step.
    scale = jnp.ones((4 * H, 1), jnp.float32).at[2 * H:3 * H].set(2.0)
    w_ih = params["w_ih"].astype(jnp.float32) * scale                        # (4H, 1) f32
    w_hh = (params["w_hh"].astype(jnp.float32) * scale).astype(jnp.bfloat16)  # (4H, H) bf16
    bias = ((params["b_ih"] + params["b_hh"]).astype(jnp.float32)
            .reshape(4 * H, 1) * scale)                                      # (4H, 1) f32
    w_out = params["w_out"].astype(jnp.bfloat16)                             # (2, H) bf16
    b_out = params["b_out"].astype(jnp.float32).reshape(2, 1)                # (2, 1) f32

    # Lane-dense x: (T, B) with time on sublanes, batch on lanes (no size-1
    # lane dim, no (T, B, 4H) scratch at all).
    x_tb = jnp.transpose(x.astype(jnp.float32).reshape(B, T), (1, 0))        # (T, B)
    lens = x_lens.astype(jnp.int32).reshape(1, B)                            # (1, B)

    # Per-sequence recurrences are independent: split the batch (lane) axis
    # across a "parallel" grid when it is large (v7x megacore win; no-op here).
    if B <= 128:
        BB, B_pad = B, B
    else:
        BB = 128
        B_pad = ((B + BB - 1) // BB) * BB
        x_tb = jnp.pad(x_tb, ((0, 0), (0, B_pad - B)))
        lens = jnp.pad(lens, ((0, 0), (0, B_pad - B)), constant_values=1)
    n_blk = B_pad // BB

    full = lambda shape: pl.BlockSpec(shape, lambda i, _n=len(shape): (0,) * _n)

    # VMEM: dominant resident array is the (T, BB) x block (lane-padded).
    x_block_bytes = T * max(BB, 128) * 4
    vmem_limit = int(min(64 * 2 ** 20, max(32 * 2 ** 20, 4 * x_block_bytes)))

    out = pl.pallas_call(
        _lstm_kernel,
        out_shape=jax.ShapeDtypeStruct((2, B_pad), jnp.float32),
        grid_spec=pltpu.PrefetchScalarGridSpec(
            num_scalar_prefetch=0,
            grid=(n_blk,),                   # batch blocks; time loop is in-kernel
            in_specs=[
                pl.BlockSpec((T, BB), lambda i: (0, i)),   # x (whole sequence, batch block)
                pl.BlockSpec((1, BB), lambda i: (0, i)),   # lens
                full((4 * H, 1)),                          # W_ih  (g rows pre-scaled)
                full((4 * H, H)),                          # W_hh  bf16 (g rows pre-scaled)
                full((4 * H, 1)),                          # b_ih + b_hh (g rows pre-scaled)
                full((2, H)),                              # W_out bf16
                full((2, 1)),                              # b_out
            ],
            out_specs=pl.BlockSpec((2, BB), lambda i: (0, i)),
        ),
        compiler_params=pltpu.CompilerParams(
            dimension_semantics=("parallel",),
            vmem_limit_bytes=vmem_limit),
    )(x_tb, lens, w_ih, w_hh, bias, w_out, b_out)

    return jnp.transpose(out[:, :B], (1, 0))               # (B, 2)
    # TODO(synk): x_lens == 0 would keep the latch at zeros, whereas PyTorch's
    # lstm_out[arange(B), -1] returns the last hidden state; unreachable for
    # valid lengths in [1, T].


def parity_lstm_reference(x, x_lens, params):
    """Pure-JAX f32 reference matching torch.nn.LSTM + Linear semantics."""
    B, T, _ = x.shape
    H = params["w_hh"].shape[1]
    w_ih, w_hh = params["w_ih"], params["w_hh"]
    b = params["b_ih"] + params["b_hh"]

    def step(carry, xt):
        h, c = carry
        z = xt @ w_ih.T + h @ w_hh.T + b
        i = jax.nn.sigmoid(z[:, 0 * H:1 * H])
        f = jax.nn.sigmoid(z[:, 1 * H:2 * H])
        g = jnp.tanh(z[:, 2 * H:3 * H])
        o = jax.nn.sigmoid(z[:, 3 * H:4 * H])
        c = f * c + i * g
        h = o * jnp.tanh(c)
        return (h, c), h

    h0 = jnp.zeros((B, H), jnp.float32)
    c0 = jnp.zeros((B, H), jnp.float32)
    _, hs = jax.lax.scan(step, (h0, c0), jnp.transpose(x, (1, 0, 2)))
    hs = jnp.transpose(hs, (1, 0, 2))                  # (B, T, H)
    hidden = hs[jnp.arange(B), x_lens - 1]             # (B, H)
    return hidden @ params["w_out"].T + params["b_out"]


def init_params(key, hidden_dim=16):
    """Deterministic init mimicking PyTorch's U(-1/sqrt(H), 1/sqrt(H))."""
    H = hidden_dim
    k = 1.0 / jnp.sqrt(jnp.float32(H))
    keys = jax.random.split(key, 6)
    u = lambda kk, shape: jax.random.uniform(kk, shape, jnp.float32, -k, k)
    return {
        "w_ih": u(keys[0], (4 * H, 1)),    # LSTM weight_ih_l0
        "w_hh": u(keys[1], (4 * H, H)),    # LSTM weight_hh_l0
        "b_ih": u(keys[2], (4 * H,)),
        "b_hh": u(keys[3], (4 * H,)),
        "w_out": u(keys[4], (2, H)),       # Linear weight
        "b_out": u(keys[5], (2,)),         # Linear bias
    }


if __name__ == "__main__":
    key = jax.random.PRNGKey(0)
    k_param, k_x, k_len = jax.random.split(key, 3)

    B, T, H = 2, 8, 16
    params = init_params(k_param, hidden_dim=H)

    # Parity-task style input: binary sequence of shape (B, T, 1)
    x = jax.random.bernoulli(k_x, 0.5, (B, T, 1)).astype(jnp.float32)
    x_lens = jax.random.randint(k_len, (B,), 1, T + 1).astype(jnp.int32)

    out = jax.block_until_ready(parity_lstm_forward(x, x_lens, params))
    ref = parity_lstm_reference(x, x_lens, params)

    assert out.shape == (B, 2), out.shape
    # bf16 MXU operands on the recurrent path -> loosened tolerance vs f32 ref.
    assert jnp.max(jnp.abs(out - ref)) < 5e-2, (out, ref)

    print("KERNEL_OK")
</pallas_src>

<mosaic_0001>
module attributes {stable_mosaic.version = 11 : i64} {
  func.func @_lstm_kernel(%arg0: i32, %arg1: memref<8x2xf32, #tpu.memory_space<vmem>>, %arg2: memref<1x2xi32, #tpu.memory_space<vmem>>, %arg3: memref<64x1xf32, #tpu.memory_space<vmem>>, %arg4: memref<64x16xbf16, #tpu.memory_space<vmem>>, %arg5: memref<64x1xf32, #tpu.memory_space<vmem>>, %arg6: memref<2x16xbf16, #tpu.memory_space<vmem>>, %arg7: memref<2x1xf32, #tpu.memory_space<vmem>>, %arg8: memref<2x2xf32, #tpu.memory_space<vmem>>) attributes {dimension_semantics = [#tpu.dimension_semantics<parallel>], iteration_bounds = array<i64: 1>, scalar_prefetch = 0 : i64, scratch_operands = 0 : i64, tpu.core_type = #tpu.core_type<tc>, window_params = [{transform_indices = @transform_0, window_bounds = array<i64: 8, 2>}, {transform_indices = @transform_1, window_bounds = array<i64: 1, 2>}, {pipeline_mode = #tpu.pipeline_mode<synchronous>, transform_indices = @transform_2, window_bounds = array<i64: 64, 1>}, {pipeline_mode = #tpu.pipeline_mode<synchronous>, transform_indices = @transform_3, window_bounds = array<i64: 64, 16>}, {pipeline_mode = #tpu.pipeline_mode<synchronous>, transform_indices = @transform_4, window_bounds = array<i64: 64, 1>}, {pipeline_mode = #tpu.pipeline_mode<synchronous>, transform_indices = @transform_5, window_bounds = array<i64: 2, 16>}, {pipeline_mode = #tpu.pipeline_mode<synchronous>, transform_indices = @transform_6, window_bounds = array<i64: 2, 1>}, {transform_indices = @transform_7, window_bounds = array<i64: 2, 2>}]} {
    %c0 = arith.constant 0 : index
    %c0_0 = arith.constant 0 : index
    %0 = vector.load %arg3[%c0, %c0_0] : memref<64x1xf32, #tpu.memory_space<vmem>>, vector<64x1xf32>
    %1 = vector.shape_cast %0 : vector<64x1xf32> to vector<64x1xf32>
    %2 = vector.broadcast %1 : vector<64x1xf32> to vector<64x2xf32>
    %c0_1 = arith.constant 0 : index
    %c0_2 = arith.constant 0 : index
    %3 = vector.load %arg5[%c0_1, %c0_2] : memref<64x1xf32, #tpu.memory_space<vmem>>, vector<64x1xf32>
    %4 = vector.shape_cast %3 : vector<64x1xf32> to vector<64x1xf32>
    %5 = vector.broadcast %4 : vector<64x1xf32> to vector<64x2xf32>
    %c0_3 = arith.constant 0 : index
    %c0_4 = arith.constant 0 : index
    %6 = vector.load %arg4[%c0_3, %c0_4] : memref<64x16xbf16, #tpu.memory_space<vmem>>, vector<64x16xbf16>
    %c0_5 = arith.constant 0 : index
    %c0_6 = arith.constant 0 : index
    %7 = vector.load %arg2[%c0_5, %c0_6] : memref<1x2xi32, #tpu.memory_space<vmem>>, vector<1x2xi32>
    %c1_i32 = arith.constant 1 : i32
    %8 = vector.broadcast %c1_i32 : i32 to vector<1x2xi32>
    %9 = arith.subi %7, %8 : vector<1x2xi32>
    %10 = vector.shape_cast %9 : vector<1x2xi32> to vector<1x2xi32>
    %11 = vector.broadcast %10 : vector<1x2xi32> to vector<16x2xi32>
    %cst = arith.constant 0.000000e+00 : f32
    %12 = vector.broadcast %cst : f32 to vector<16x2xf32>
    %cst_7 = arith.constant 0.000000e+00 : f32
    %13 = vector.broadcast %cst_7 : f32 to vector<16x2xf32>
    %cst_8 = arith.constant 0.000000e+00 : f32
    %14 = vector.broadcast %cst_8 : f32 to vector<16x2xf32>
    %c0_i32 = arith.constant 0 : i32
    %15 = arith.index_cast %c0_i32 : i32 to index
    %c0_9 = arith.constant 0 : index
    %16 = vector.load %arg1[%15, %c0_9] : memref<8x2xf32, #tpu.memory_space<vmem>>, vector<1x2xf32>
    %17 = vector.broadcast %16 : vector<1x2xf32> to vector<64x2xf32>
    %18 = arith.mulf %2, %17 : vector<64x2xf32>
    %19 = arith.addf %18, %5 : vector<64x2xf32>
    %20 = arith.truncf %12 : vector<16x2xf32> to vector<16x2xbf16>
    %cst_10 = arith.constant dense<0.000000e+00> : vector<64x2xf32>
    %21 = tpu.matmul %6, %20, %cst_10 {dimension_numbers = #tpu.dot_dimension_numbers<[1], [0], [0], [1], [0, 0, 1, 1], [], []>} : vector<64x16xbf16>, vector<16x2xbf16>, vector<64x2xf32> -> vector<64x2xf32>
    %22 = arith.addf %19, %21 : vector<64x2xf32>
    %23 = arith.negf %22 : vector<64x2xf32>
    %24 = math.exp %23 : vector<64x2xf32>
    %cst_11 = arith.constant 1.000000e+00 : f32
    %25 = vector.broadcast %cst_11 : f32 to vector<64x2xf32>
    %26 = arith.addf %25, %24 : vector<64x2xf32>
    %27 = arith.divf %25, %26 : vector<64x2xf32>
    %28 = vector.extract_strided_slice %27 {offsets = [0, 0], sizes = [16, 2], strides = [1, 1]} : vector<64x2xf32> to vector<16x2xf32>
    %29 = vector.extract_strided_slice %27 {offsets = [16, 0], sizes = [16, 2], strides = [1, 1]} : vector<64x2xf32> to vector<16x2xf32>
    %30 = vector.extract_strided_slice %27 {offsets = [32, 0], sizes = [16, 2], strides = [1, 1]} : vector<64x2xf32> to vector<16x2xf32>
    %cst_12 = arith.constant 2.000000e+00 : f32
    %31 = vector.broadcast %cst_12 : f32 to vector<16x2xf32>
    %32 = arith.mulf %31, %30 : vector<16x2xf32>
    %cst_13 = arith.constant 1.000000e+00 : f32
    %33 = vector.broadcast %cst_13 : f32 to vector<16x2xf32>
    %34 = arith.subf %32, %33 : vector<16x2xf32>
    %35 = vector.extract_strided_slice %27 {offsets = [48, 0], sizes = [16, 2], strides = [1, 1]} : vector<64x2xf32> to vector<16x2xf32>
    %36 = arith.mulf %29, %13 : vector<16x2xf32>
    %37 = arith.mulf %28, %34 : vector<16x2xf32>
    %38 = arith.addf %36, %37 : vector<16x2xf32>
    %39 = math.tanh %38 : vector<16x2xf32>
    %40 = arith.mulf %35, %39 : vector<16x2xf32>
    %41 = vector.broadcast %c0_i32 : i32 to vector<16x2xi32>
    %42 = arith.cmpi eq, %11, %41 : vector<16x2xi32>
    %43 = arith.select %42, %40, %14 : vector<16x2xi1>, vector<16x2xf32>
    %c1_i32_14 = arith.constant 1 : i32
    %44 = arith.index_cast %c1_i32_14 : i32 to index
    %c0_15 = arith.constant 0 : index
    %45 = vector.load %arg1[%44, %c0_15] : memref<8x2xf32, #tpu.memory_space<vmem>>, vector<1x2xf32>
    %46 = vector.broadcast %45 : vector<1x2xf32> to vector<64x2xf32>
    %47 = arith.mulf %2, %46 : vector<64x2xf32>
    %48 = arith.addf %47, %5 : vector<64x2xf32>
    %49 = arith.truncf %40 : vector<16x2xf32> to vector<16x2xbf16>
    %cst_16 = arith.constant dense<0.000000e+00> : vector<64x2xf32>
    %50 = tpu.matmul %6, %49, %cst_16 {dimension_numbers = #tpu.dot_dimension_numbers<[1], [0], [0], [1], [0, 0, 1, 1], [], []>} : vector<64x16xbf16>, vector<16x2xbf16>, vector<64x2xf32> -> vector<64x2xf32>
    %51 = arith.addf %48, %50 : vector<64x2xf32>
    %52 = arith.negf %51 : vector<64x2xf32>
    %53 = math.exp %52 : vector<64x2xf32>
    %cst_17 = arith.constant 1.000000e+00 : f32
    %54 = vector.broadcast %cst_17 : f32 to vector<64x2xf32>
    %55 = arith.addf %54, %53 : vector<64x2xf32>
    %56 = arith.divf %54, %55 : vector<64x2xf32>
    %57 = vector.extract_strided_slice %56 {offsets = [0, 0], sizes = [16, 2], strides = [1, 1]} : vector<64x2xf32> to vector<16x2xf32>
    %58 = vector.extract_strided_slice %56 {offsets = [16, 0], sizes = [16, 2], strides = [1, 1]} : vector<64x2xf32> to vector<16x2xf32>
    %59 = vector.extract_strided_slice %56 {offsets = [32, 0], sizes = [16, 2], strides = [1, 1]} : vector<64x2xf32> to vector<16x2xf32>
    %cst_18 = arith.constant 2.000000e+00 : f32
    %60 = vector.broadcast %cst_18 : f32 to vector<16x2xf32>
    %61 = arith.mulf %60, %59 : vector<16x2xf32>
    %cst_19 = arith.constant 1.000000e+00 : f32
    %62 = vector.broadcast %cst_19 : f32 to vector<16x2xf32>
    %63 = arith.subf %61, %62 : vector<16x2xf32>
    %64 = vector.extract_strided_slice %56 {offsets = [48, 0], sizes = [16, 2], strides = [1, 1]} : vector<64x2xf32> to vector<16x2xf32>
    %65 = arith.mulf %58, %38 : vector<16x2xf32>
    %66 = arith.mulf %57, %63 : vector<16x2xf32>
    %67 = arith.addf %65, %66 : vector<16x2xf32>
    %68 = math.tanh %67 : vector<16x2xf32>
    %69 = arith.mulf %64, %68 : vector<16x2xf32>
    %70 = vector.broadcast %c1_i32_14 : i32 to vector<16x2xi32>
    %71 = arith.cmpi eq, %11, %70 : vector<16x2xi32>
    %72 = arith.select %71, %69, %43 : vector<16x2xi1>, vector<16x2xf32>
    %c2_i32 = arith.constant 2 : i32
    %73 = arith.index_cast %c2_i32 : i32 to index
    %c0_20 = arith.constant 0 : index
    %74 = vector.load %arg1[%73, %c0_20] : memref<8x2xf32, #tpu.memory_space<vmem>>, vector<1x2xf32>
    %75 = vector.broadcast %74 : vector<1x2xf32> to vector<64x2xf32>
    %76 = arith.mulf %2, %75 : vector<64x2xf32>
    %77 = arith.addf %76, %5 : vector<64x2xf32>
    %78 = arith.truncf %69 : vector<16x2xf32> to vector<16x2xbf16>
    %cst_21 = arith.constant dense<0.000000e+00> : vector<64x2xf32>
    %79 = tpu.matmul %6, %78, %cst_21 {dimension_numbers = #tpu.dot_dimension_numbers<[1], [0], [0], [1], [0, 0, 1, 1], [], []>} : vector<64x16xbf16>, vector<16x2xbf16>, vector<64x2xf32> -> vector<64x2xf32>
    %80 = arith.addf %77, %79 : vector<64x2xf32>
    %81 = arith.negf %80 : vector<64x2xf32>
    %82 = math.exp %81 : vector<64x2xf32>
    %cst_22 = arith.constant 1.000000e+00 : f32
    %83 = vector.broadcast %cst_22 : f32 to vector<64x2xf32>
    %84 = arith.addf %83, %82 : vector<64x2xf32>
    %85 = arith.divf %83, %84 : vector<64x2xf32>
    %86 = vector.extract_strided_slice %85 {offsets = [0, 0], sizes = [16, 2], strides = [1, 1]} : vector<64x2xf32> to vector<16x2xf32>
    %87 = vector.extract_strided_slice %85 {offsets = [16, 0], sizes = [16, 2], strides = [1, 1]} : vector<64x2xf32> to vector<16x2xf32>
    %88 = vector.extract_strided_slice %85 {offsets = [32, 0], sizes = [16, 2], strides = [1, 1]} : vector<64x2xf32> to vector<16x2xf32>
    %cst_23 = arith.constant 2.000000e+00 : f32
    %89 = vector.broadcast %cst_23 : f32 to vector<16x2xf32>
    %90 = arith.mulf %89, %88 : vector<16x2xf32>
    %cst_24 = arith.constant 1.000000e+00 : f32
    %91 = vector.broadcast %cst_24 : f32 to vector<16x2xf32>
    %92 = arith.subf %90, %91 : vector<16x2xf32>
    %93 = vector.extract_strided_slice %85 {offsets = [48, 0], sizes = [16, 2], strides = [1, 1]} : vector<64x2xf32> to vector<16x2xf32>
    %94 = arith.mulf %87, %67 : vector<16x2xf32>
    %95 = arith.mulf %86, %92 : vector<16x2xf32>
    %96 = arith.addf %94, %95 : vector<16x2xf32>
    %97 = math.tanh %96 : vector<16x2xf32>
    %98 = arith.mulf %93, %97 : vector<16x2xf32>
    %99 = vector.broadcast %c2_i32 : i32 to vector<16x2xi32>
    %100 = arith.cmpi eq, %11, %99 : vector<16x2xi32>
    %101 = arith.select %100, %98, %72 : vector<16x2xi1>, vector<16x2xf32>
    %c3_i32 = arith.constant 3 : i32
    %102 = arith.index_cast %c3_i32 : i32 to index
    %c0_25 = arith.constant 0 : index
    %103 = vector.load %arg1[%102, %c0_25] : memref<8x2xf32, #tpu.memory_space<vmem>>, vector<1x2xf32>
    %104 = vector.broadcast %103 : vector<1x2xf32> to vector<64x2xf32>
    %105 = arith.mulf %2, %104 : vector<64x2xf32>
    %106 = arith.addf %105, %5 : vector<64x2xf32>
    %107 = arith.truncf %98 : vector<16x2xf32> to vector<16x2xbf16>
    %cst_26 = arith.constant dense<0.000000e+00> : vector<64x2xf32>
    %108 = tpu.matmul %6, %107, %cst_26 {dimension_numbers = #tpu.dot_dimension_numbers<[1], [0], [0], [1], [0, 0, 1, 1], [], []>} : vector<64x16xbf16>, vector<16x2xbf16>, vector<64x2xf32> -> vector<64x2xf32>
    %109 = arith.addf %106, %108 : vector<64x2xf32>
    %110 = arith.negf %109 : vector<64x2xf32>
    %111 = math.exp %110 : vector<64x2xf32>
    %cst_27 = arith.constant 1.000000e+00 : f32
    %112 = vector.broadcast %cst_27 : f32 to vector<64x2xf32>
    %113 = arith.addf %112, %111 : vector<64x2xf32>
    %114 = arith.divf %112, %113 : vector<64x2xf32>
    %115 = vector.extract_strided_slice %114 {offsets = [0, 0], sizes = [16, 2], strides = [1, 1]} : vector<64x2xf32> to vector<16x2xf32>
    %116 = vector.extract_strided_slice %114 {offsets = [16, 0], sizes = [16, 2], strides = [1, 1]} : vector<64x2xf32> to vector<16x2xf32>
    %117 = vector.extract_strided_slice %114 {offsets = [32, 0], sizes = [16, 2], strides = [1, 1]} : vector<64x2xf32> to vector<16x2xf32>
    %cst_28 = arith.constant 2.000000e+00 : f32
    %118 = vector.broadcast %cst_28 : f32 to vector<16x2xf32>
    %119 = arith.mulf %118, %117 : vector<16x2xf32>
    %cst_29 = arith.constant 1.000000e+00 : f32
    %120 = vector.broadcast %cst_29 : f32 to vector<16x2xf32>
    %121 = arith.subf %119, %120 : vector<16x2xf32>
    %122 = vector.extract_strided_slice %114 {offsets = [48, 0], sizes = [16, 2], strides = [1, 1]} : vector<64x2xf32> to vector<16x2xf32>
    %123 = arith.mulf %116, %96 : vector<16x2xf32>
    %124 = arith.mulf %115, %121 : vector<16x2xf32>
    %125 = arith.addf %123, %124 : vector<16x2xf32>
    %126 = math.tanh %125 : vector<16x2xf32>
    %127 = arith.mulf %122, %126 : vector<16x2xf32>
    %128 = vector.broadcast %c3_i32 : i32 to vector<16x2xi32>
    %129 = arith.cmpi eq, %11, %128 : vector<16x2xi32>
    %130 = arith.select %129, %127, %101 : vector<16x2xi1>, vector<16x2xf32>
    %c4_i32 = arith.constant 4 : i32
    %131 = arith.index_cast %c4_i32 : i32 to index
    %c0_30 = arith.constant 0 : index
    %132 = vector.load %arg1[%131, %c0_30] : memref<8x2xf32, #tpu.memory_space<vmem>>, vector<1x2xf32>
    %133 = vector.broadcast %132 : vector<1x2xf32> to vector<64x2xf32>
    %134 = arith.mulf %2, %133 : vector<64x2xf32>
    %135 = arith.addf %134, %5 : vector<64x2xf32>
    %136 = arith.truncf %127 : vector<16x2xf32> to vector<16x2xbf16>
    %cst_31 = arith.constant dense<0.000000e+00> : vector<64x2xf32>
    %137 = tpu.matmul %6, %136, %cst_31 {dimension_numbers = #tpu.dot_dimension_numbers<[1], [0], [0], [1], [0, 0, 1, 1], [], []>} : vector<64x16xbf16>, vector<16x2xbf16>, vector<64x2xf32> -> vector<64x2xf32>
    %138 = arith.addf %135, %137 : vector<64x2xf32>
    %139 = arith.negf %138 : vector<64x2xf32>
    %140 = math.exp %139 : vector<64x2xf32>
    %cst_32 = arith.constant 1.000000e+00 : f32
    %141 = vector.broadcast %cst_32 : f32 to vector<64x2xf32>
    %142 = arith.addf %141, %140 : vector<64x2xf32>
    %143 = arith.divf %141, %142 : vector<64x2xf32>
    %144 = vector.extract_strided_slice %143 {offsets = [0, 0], sizes = [16, 2], strides = [1, 1]} : vector<64x2xf32> to vector<16x2xf32>
    %145 = vector.extract_strided_slice %143 {offsets = [16, 0], sizes = [16, 2], strides = [1, 1]} : vector<64x2xf32> to vector<16x2xf32>
    %146 = vector.extract_strided_slice %143 {offsets = [32, 0], sizes = [16, 2], strides = [1, 1]} : vector<64x2xf32> to vector<16x2xf32>
    %cst_33 = arith.constant 2.000000e+00 : f32
    %147 = vector.broadcast %cst_33 : f32 to vector<16x2xf32>
    %148 = arith.mulf %147, %146 : vector<16x2xf32>
    %cst_34 = arith.constant 1.000000e+00 : f32
    %149 = vector.broadcast %cst_34 : f32 to vector<16x2xf32>
    %150 = arith.subf %148, %149 : vector<16x2xf32>
    %151 = vector.extract_strided_slice %143 {offsets = [48, 0], sizes = [16, 2], strides = [1, 1]} : vector<64x2xf32> to vector<16x2xf32>
    %152 = arith.mulf %145, %125 : vector<16x2xf32>
    %153 = arith.mulf %144, %150 : vector<16x2xf32>
    %154 = arith.addf %152, %153 : vector<16x2xf32>
    %155 = math.tanh %154 : vector<16x2xf32>
    %156 = arith.mulf %151, %155 : vector<16x2xf32>
    %157 = vector.broadcast %c4_i32 : i32 to vector<16x2xi32>
    %158 = arith.cmpi eq, %11, %157 : vector<16x2xi32>
    %159 = arith.select %158, %156, %130 : vector<16x2xi1>, vector<16x2xf32>
    %c5_i32 = arith.constant 5 : i32
    %160 = arith.index_cast %c5_i32 : i32 to index
    %c0_35 = arith.constant 0 : index
    %161 = vector.load %arg1[%160, %c0_35] : memref<8x2xf32, #tpu.memory_space<vmem>>, vector<1x2xf32>
    %162 = vector.broadcast %161 : vector<1x2xf32> to vector<64x2xf32>
    %163 = arith.mulf %2, %162 : vector<64x2xf32>
    %164 = arith.addf %163, %5 : vector<64x2xf32>
    %165 = arith.truncf %156 : vector<16x2xf32> to vector<16x2xbf16>
    %cst_36 = arith.constant dense<0.000000e+00> : vector<64x2xf32>
    %166 = tpu.matmul %6, %165, %cst_36 {dimension_numbers = #tpu.dot_dimension_numbers<[1], [0], [0], [1], [0, 0, 1, 1], [], []>} : vector<64x16xbf16>, vector<16x2xbf16>, vector<64x2xf32> -> vector<64x2xf32>
    %167 = arith.addf %164, %166 : vector<64x2xf32>
    %168 = arith.negf %167 : vector<64x2xf32>
    %169 = math.exp %168 : vector<64x2xf32>
    %cst_37 = arith.constant 1.000000e+00 : f32
    %170 = vector.broadcast %cst_37 : f32 to vector<64x2xf32>
    %171 = arith.addf %170, %169 : vector<64x2xf32>
    %172 = arith.divf %170, %171 : vector<64x2xf32>
    %173 = vector.extract_strided_slice %172 {offsets = [0, 0], sizes = [16, 2], strides = [1, 1]} : vector<64x2xf32> to vector<16x2xf32>
    %174 = vector.extract_strided_slice %172 {offsets = [16, 0], sizes = [16, 2], strides = [1, 1]} : vector<64x2xf32> to vector<16x2xf32>
    %175 = vector.extract_strided_slice %172 {offsets = [32, 0], sizes = [16, 2], strides = [1, 1]} : vector<64x2xf32> to vector<16x2xf32>
    %cst_38 = arith.constant 2.000000e+00 : f32
    %176 = vector.broadcast %cst_38 : f32 to vector<16x2xf32>
    %177 = arith.mulf %176, %175 : vector<16x2xf32>
    %cst_39 = arith.constant 1.000000e+00 : f32
    %178 = vector.broadcast %cst_39 : f32 to vector<16x2xf32>
    %179 = arith.subf %177, %178 : vector<16x2xf32>
    %180 = vector.extract_strided_slice %172 {offsets = [48, 0], sizes = [16, 2], strides = [1, 1]} : vector<64x2xf32> to vector<16x2xf32>
    %181 = arith.mulf %174, %154 : vector<16x2xf32>
    %182 = arith.mulf %173, %179 : vector<16x2xf32>
    %183 = arith.addf %181, %182 : vector<16x2xf32>
    %184 = math.tanh %183 : vector<16x2xf32>
    %185 = arith.mulf %180, %184 : vector<16x2xf32>
    %186 = vector.broadcast %c5_i32 : i32 to vector<16x2xi32>
    %187 = arith.cmpi eq, %11, %186 : vector<16x2xi32>
    %188 = arith.select %187, %185, %159 : vector<16x2xi1>, vector<16x2xf32>
    %c6_i32 = arith.constant 6 : i32
    %189 = arith.index_cast %c6_i32 : i32 to index
    %c0_40 = arith.constant 0 : index
    %190 = vector.load %arg1[%189, %c0_40] : memref<8x2xf32, #tpu.memory_space<vmem>>, vector<1x2xf32>
    %191 = vector.broadcast %190 : vector<1x2xf32> to vector<64x2xf32>
    %192 = arith.mulf %2, %191 : vector<64x2xf32>
    %193 = arith.addf %192, %5 : vector<64x2xf32>
    %194 = arith.truncf %185 : vector<16x2xf32> to vector<16x2xbf16>
    %cst_41 = arith.constant dense<0.000000e+00> : vector<64x2xf32>
    %195 = tpu.matmul %6, %194, %cst_41 {dimension_numbers = #tpu.dot_dimension_numbers<[1], [0], [0], [1], [0, 0, 1, 1], [], []>} : vector<64x16xbf16>, vector<16x2xbf16>, vector<64x2xf32> -> vector<64x2xf32>
    %196 = arith.addf %193, %195 : vector<64x2xf32>
    %197 = arith.negf %196 : vector<64x2xf32>
    %198 = math.exp %197 : vector<64x2xf32>
    %cst_42 = arith.constant 1.000000e+00 : f32
    %199 = vector.broadcast %cst_42 : f32 to vector<64x2xf32>
    %200 = arith.addf %199, %198 : vector<64x2xf32>
    %201 = arith.divf %199, %200 : vector<64x2xf32>
    %202 = vector.extract_strided_slice %201 {offsets = [0, 0], sizes = [16, 2], strides = [1, 1]} : vector<64x2xf32> to vector<16x2xf32>
    %203 = vector.extract_strided_slice %201 {offsets = [16, 0], sizes = [16, 2], strides = [1, 1]} : vector<64x2xf32> to vector<16x2xf32>
    %204 = vector.extract_strided_slice %201 {offsets = [32, 0], sizes = [16, 2], strides = [1, 1]} : vector<64x2xf32> to vector<16x2xf32>
    %cst_43 = arith.constant 2.000000e+00 : f32
    %205 = vector.broadcast %cst_43 : f32 to vector<16x2xf32>
    %206 = arith.mulf %205, %204 : vector<16x2xf32>
    %cst_44 = arith.constant 1.000000e+00 : f32
    %207 = vector.broadcast %cst_44 : f32 to vector<16x2xf32>
    %208 = arith.subf %206, %207 : vector<16x2xf32>
    %209 = vector.extract_strided_slice %201 {offsets = [48, 0], sizes = [16, 2], strides = [1, 1]} : vector<64x2xf32> to vector<16x2xf32>
    %210 = arith.mulf %203, %183 : vector<16x2xf32>
    %211 = arith.mulf %202, %208 : vector<16x2xf32>
    %212 = arith.addf %210, %211 : vector<16x2xf32>
    %213 = math.tanh %212 : vector<16x2xf32>
    %214 = arith.mulf %209, %213 : vector<16x2xf32>
    %215 = vector.broadcast %c6_i32 : i32 to vector<16x2xi32>
    %216 = arith.cmpi eq, %11, %215 : vector<16x2xi32>
    %217 = arith.select %216, %214, %188 : vector<16x2xi1>, vector<16x2xf32>
    %c7_i32 = arith.constant 7 : i32
    %218 = arith.index_cast %c7_i32 : i32 to index
    %c0_45 = arith.constant 0 : index
    %219 = vector.load %arg1[%218, %c0_45] : memref<8x2xf32, #tpu.memory_space<vmem>>, vector<1x2xf32>
    %220 = vector.broadcast %219 : vector<1x2xf32> to vector<64x2xf32>
    %221 = arith.mulf %2, %220 : vector<64x2xf32>
    %222 = arith.addf %221, %5 : vector<64x2xf32>
    %223 = arith.truncf %214 : vector<16x2xf32> to vector<16x2xbf16>
    %cst_46 = arith.constant dense<0.000000e+00> : vector<64x2xf32>
    %224 = tpu.matmul %6, %223, %cst_46 {dimension_numbers = #tpu.dot_dimension_numbers<[1], [0], [0], [1], [0, 0, 1, 1], [], []>} : vector<64x16xbf16>, vector<16x2xbf16>, vector<64x2xf32> -> vector<64x2xf32>
    %225 = arith.addf %222, %224 : vector<64x2xf32>
    %226 = arith.negf %225 : vector<64x2xf32>
    %227 = math.exp %226 : vector<64x2xf32>
    %cst_47 = arith.constant 1.000000e+00 : f32
    %228 = vector.broadcast %cst_47 : f32 to vector<64x2xf32>
    %229 = arith.addf %228, %227 : vector<64x2xf32>
    %230 = arith.divf %228, %229 : vector<64x2xf32>
    %231 = vector.extract_strided_slice %230 {offsets = [0, 0], sizes = [16, 2], strides = [1, 1]} : vector<64x2xf32> to vector<16x2xf32>
    %232 = vector.extract_strided_slice %230 {offsets = [16, 0], sizes = [16, 2], strides = [1, 1]} : vector<64x2xf32> to vector<16x2xf32>
    %233 = vector.extract_strided_slice %230 {offsets = [32, 0], sizes = [16, 2], strides = [1, 1]} : vector<64x2xf32> to vector<16x2xf32>
    %cst_48 = arith.constant 2.000000e+00 : f32
    %234 = vector.broadcast %cst_48 : f32 to vector<16x2xf32>
    %235 = arith.mulf %234, %233 : vector<16x2xf32>
    %cst_49 = arith.constant 1.000000e+00 : f32
    %236 = vector.broadcast %cst_49 : f32 to vector<16x2xf32>
    %237 = arith.subf %235, %236 : vector<16x2xf32>
    %238 = vector.extract_strided_slice %230 {offsets = [48, 0], sizes = [16, 2], strides = [1, 1]} : vector<64x2xf32> to vector<16x2xf32>
    %239 = arith.mulf %232, %212 : vector<16x2xf32>
    %240 = arith.mulf %231, %237 : vector<16x2xf32>
    %241 = arith.addf %239, %240 : vector<16x2xf32>
    %242 = math.tanh %241 : vector<16x2xf32>
    %243 = arith.mulf %238, %242 : vector<16x2xf32>
    %244 = vector.broadcast %c7_i32 : i32 to vector<16x2xi32>
    %245 = arith.cmpi eq, %11, %244 : vector<16x2xi32>
    %246 = arith.select %245, %243, %217 : vector<16x2xi1>, vector<16x2xf32>
    %c8_i32 = arith.constant 8 : i32
    %c0_50 = arith.constant 0 : index
    %c0_51 = arith.constant 0 : index
    %247 = vector.load %arg6[%c0_50, %c0_51] : memref<2x16xbf16, #tpu.memory_space<vmem>>, vector<2x16xbf16>
    %248 = arith.truncf %246 : vector<16x2xf32> to vector<16x2xbf16>
    %cst_52 = arith.constant dense<0.000000e+00> : vector<2x2xf32>
    %249 = tpu.matmul %247, %248, %cst_52 {dimension_numbers = #tpu.dot_dimension_numbers<[1], [0], [0], [1], [0, 0, 1, 1], [], []>} : vector<2x16xbf16>, vector<16x2xbf16>, vector<2x2xf32> -> vector<2x2xf32>
    %c0_53 = arith.constant 0 : index
    %c0_54 = arith.constant 0 : index
    %250 = vector.load %arg7[%c0_53, %c0_54] : memref<2x1xf32, #tpu.memory_space<vmem>>, vector<2x1xf32>
    %251 = vector.broadcast %250 : vector<2x1xf32> to vector<2x2xf32>
    %252 = arith.addf %249, %251 : vector<2x2xf32>
    %c0_55 = arith.constant 0 : index
    %c0_56 = arith.constant 0 : index
    %253 = vector.load %arg8[%c0_55, %c0_56] : memref<2x2xf32, #tpu.memory_space<vmem>>, vector<2x2xf32>
    tpu.vector_store %arg8[%c0_55, %c0_56], %252 {strides = array<i32>} : memref<2x2xf32, #tpu.memory_space<vmem>>, vector<2x2xf32>,
    return
  }
  func.func @transform_0(%arg0: i32) -> (i32, i32) {
    %c0_i32 = arith.constant 0 : i32
    %c0_i32_0 = arith.constant 0 : i32
    return %c0_i32, %arg0 : i32, i32
  }
  func.func @transform_1(%arg0: i32) -> (i32, i32) {
    %c0_i32 = arith.constant 0 : i32
    %c0_i32_0 = arith.constant 0 : i32
    return %c0_i32, %arg0 : i32, i32
  }
  func.func @transform_2(%arg0: i32) -> (i32, i32) {
    %c0_i32 = arith.constant 0 : i32
    %c0_i32_0 = arith.constant 0 : i32
    %c0_i32_1 = arith.constant 0 : i32
    return %c0_i32, %c0_i32_0 : i32, i32
  }
  func.func @transform_3(%arg0: i32) -> (i32, i32) {
    %c0_i32 = arith.constant 0 : i32
    %c0_i32_0 = arith.constant 0 : i32
    %c0_i32_1 = arith.constant 0 : i32
    return %c0_i32, %c0_i32_0 : i32, i32
  }
  func.func @transform_4(%arg0: i32) -> (i32, i32) {
    %c0_i32 = arith.constant 0 : i32
    %c0_i32_0 = arith.constant 0 : i32
    %c0_i32_1 = arith.constant 0 : i32
    return %c0_i32, %c0_i32_0 : i32, i32
  }
  func.func @transform_5(%arg0: i32) -> (i32, i32) {
    %c0_i32 = arith.constant 0 : i32
    %c0_i32_0 = arith.constant 0 : i32
    %c0_i32_1 = arith.constant 0 : i32
    return %c0_i32, %c0_i32_0 : i32, i32
  }
  func.func @transform_6(%arg0: i32) -> (i32, i32) {
    %c0_i32 = arith.constant 0 : i32
    %c0_i32_0 = arith.constant 0 : i32
    %c0_i32_1 = arith.constant 0 : i32
    return %c0_i32, %c0_i32_0 : i32, i32
  }
  func.func @transform_7(%arg0: i32) -> (i32, i32) {
    %c0_i32 = arith.constant 0 : i32
    %c0_i32_0 = arith.constant 0 : i32
    return %c0_i32, %arg0 : i32, i32
  }
}

</mosaic_0001>

<bundles_post_ra>
// kernel: tpu_custom_call.1
= control target key start
LH: loop header
LB: loop body
LE: loop exit
PB: predicated region body
PF: predicated region fallthrough
CT: control target
= control target key end

     0   :  { %v2095_v1 = vmov 0   ;;  %vm179_vm0 = vcmask 130048   ;;  %s2816_s0 = inlined_call_operand.vmem [shape: f32[8,2], index: 0, kind: input, shape index: {}]   ;;  %s2817_s1 = inlined_call_operand.vmem [shape: s32[1,2], index: 1, kind: input, shape index: {}]   ;;  %s2818_s2 = inlined_call_operand.vmem [shape: f32[64,1], index: 2, kind: input, shape index: {}]   ;;  %s2819_s3 = inlined_call_operand.vmem [shape: bf16[64,16], index: 3, kind: input, shape index: {}]   ;;  %s2820_s4 = inlined_call_operand.vmem [shape: f32[64,1], index: 4, kind: input, shape index: {}]   ;;  %s2821_s5 = inlined_call_operand.vmem [shape: bf16[2,16], index: 5, kind: input, shape index: {}]   ;;  %s2822_s6 = inlined_call_operand.vmem [shape: f32[2,1], index: 6, kind: input, shape index: {}]   ;;  %s2823_s7 = inlined_call_operand.hbm [shape: f32[2,2], index: 7, kind: output, shape index: {}]  }
   0x1   :  { %v2142_v0 = vld [vmem:[%s2819_s3] sm:$0xff]   ;;  %1685 = vmatprep.subr.bf16.mxu0 %v2095_v1  ;;  %v2147_v2 = vld [vmem:[%s2819_s3 + $0x8] sm:$0xff]   ;;  %1775 = vset.pattern.permute.xlu0 %v2095_v1  ;;  %v2154_v3 = vld [vmem:[%s2819_s3 + $0x10] sm:$0xff]  }
   0x2   :  { %1686 = vmatpush3.bf16.msra.mxu0 %v2095_v1  ;;  %1687 = vmatprep.mubr.msk.bf16.mxu0 %vm179_vm0, %v2142_v0  ;;  %v32_v4 = vld [vmem:[%s2818_s2 + $0x20] sm:$0xff]  ;;  %v33_v6 = vld [vmem:[%s2818_s2 + $0x28] sm:$0xff]  ;;  %v2177_v8 = vld [vmem:[%s2819_s3 + $0x18] sm:$0xff]  }
   0x3   :  { %1776 = vset.pattern.permute.xlu1 %v2095_v1  ;;  %1697 = vmatprep.mubr.msk.bf16.mxu1 %vm179_vm0, %v2142_v0  ;;  %v80_v5 = vld [vmem:[%s2820_s4 + $0x20] sm:$0xff]  ;;  %v81_v7 = vld [vmem:[%s2820_s4 + $0x28] sm:$0xff] }
   0x4   :  { %58 = vperm.xlu0 %1775, %v32_v4   ;;  %106 = vperm.xlu1 %1776, %v80_v5  }
   0x5   :  { %1688 = vmatmul.mubr.msk.bf16.vlgmr.msra.gmra.mxu0 %vm179_vm0, %v2147_v2 }
   0x6   :  { %1691 = vmatprep.mubr.msk.bf16.mxu0 %vm179_vm0, %v2154_v3 }
   0x8   :  { %63 = vperm.xlu0 %1775, %v33_v6  }
   0x9   :  { %12 = vsyncpa [#allocation3], 0  ;;  %111 = vperm.xlu1 %1776, %v81_v7   ;;  %v28_v9 = vld [vmem:[%s2818_s2] sm:$0xff]  ;;  %v29_v10 = vld [vmem:[%s2818_s2 + $0x8] sm:$0xff]  ;;  %vm2097_vm8 = vmmov 0   ;;  %s2098_s19 = smov [#allocation2]  }
   0xa   :  { %v30_v11 = vld [vmem:[%s2818_s2 + $0x10] sm:$0xff]  ;;  %v31_v12 = vld [vmem:[%s2818_s2 + $0x18] sm:$0xff]  ;;  %v76_v13 = vld [vmem:[%s2820_s4] sm:$0xff]  ;;  %s1509_s20 = sshll.u32 %s2098_s19, 4  ;;  %vm1501_vm10 = vcmask 9216   ;;  %s1510_s20 = int_to_ptr.vmem [resolvable:$true] %s1509_s20 }
   0xb   :  { %v77_v14 = vld [vmem:[%s2820_s4 + $0x8] sm:$0xff]  ;;  %v78_v15 = vld [vmem:[%s2820_s4 + $0x10] sm:$0xff]  ;;  %v79_v16 = vld [vmem:[%s2820_s4 + $0x18] sm:$0xff]  ;;  %s2073_s21 = scalar_lea.vmem %s1510_s20, 32  ;;  %p2078_p1 = scmp.lt.s32.totalorder %s1510_s20, %s1510_s20 }
   0xc   :  { %38 = vperm.xlu0 %1775, %v28_v9   ;;  %v34_v17 = vld [vmem:[%s2818_s2 + $0x30] sm:$0xff]  ;;  %v35_v18 = vld [vmem:[%s2818_s2 + $0x38] sm:$0xff]  ;;  %v1452_v21 = vld [vmem:[%s2822_s6] sm:$0x3]  ;;  %p2074_p0 = scmp.ne.s32.totalorder %s1510_s20, %s2073_s21  ;;  %p2079_p2 = scmp.lt.s32.totalorder %s2073_s21, %s2073_s21 }
   0xd   :  { %1692 = vmatmul.mubr.msk.bf16.gmra.mxu0 %vm179_vm0, %v2177_v8  ;;  %43 = vperm.xlu1 %1776, %v29_v10   ;;  %v82_v19 = vld [vmem:[%s2820_s4 + $0x30] sm:$0xff]  ;;  %v83_v20 = vld [vmem:[%s2820_s4 + $0x38] sm:$0xff]  ;;  %v2225_v22 = vld [vmem:[%s2816_s0 + $0x1] ss:$0 sm:$0xff] }
   0xe   :  { %1707 = vmatprep.mubr.msk.bf16.mxu0 %vm179_vm0, %v2142_v0  ;;  %v2230_v23 = vld [vmem:[%s2816_s0 + $0x2] ss:$0 sm:$0xff]  ;;  %v2235_v24 = vld [vmem:[%s2816_s0 + $0x3] ss:$0 sm:$0xff]  ;;  %v2240_v25 = vld [vmem:[%s2816_s0 + $0x4] ss:$0 sm:$0xff]  ;;  %p2080_p3 = por %p2079_p2, %p2078_p1 }
   0xf   :  { %v2245_v26 = vld [vmem:[%s2816_s0 + $0x5] ss:$0 sm:$0xff]  ;;  %v2250_v27 = vld [vmem:[%s2816_s0 + $0x6] ss:$0 sm:$0xff]  ;;  %v2280_v39 = vld [vmem:[%s2816_s0 + $0x7] ss:$0 sm:$0xff] }
  0x10   :  { %48 = vperm.xlu0 %1775, %v30_v11   ;;  %p2081_p4 = pnand %p2080_p3, %p2074_p0 }
  0x11   :  { %53 = vperm.xlu1 %1776, %v31_v12  }
  0x14   :  { %86 = vperm.xlu0 %1775, %v76_v13  }
  0x15   :  { %91 = vperm.xlu1 %1776, %v77_v14  }
  0x18   :  { %96 = vperm.xlu0 %1775, %v78_v15  }
  0x19   :  { %101 = vperm.xlu1 %1776, %v79_v16  }
  0x1c   :  { %68 = vperm.xlu0 %1775, %v34_v17  }
  0x1d   :  { %73 = vperm.xlu1 %1776, %v35_v18  }
  0x20   :  { %116 = vperm.xlu0 %1775, %v82_v19  }
  0x21   :  { %121 = vperm.xlu1 %1776, %v83_v20  }
  0x24   :  { %1455 = vperm.xlu0 %1775, %v1452_v21  }
  0x7f   :  { %v2252_v28 = vpop.permute.xlu0 %58  ;;  %v2254_v29 = vpop.permute.xlu1 %106 }
  0x80   :  { %v339_v30 = vmul.f32 %v2225_v22, %v2252_v28  ;;  %v499_v31 = vmul.f32 %v2230_v23, %v2252_v28  ;;  %v659_v32 = vmul.f32 %v2235_v24, %v2252_v28  ;;  %v819_v33 = vmul.f32 %v2240_v25, %v2252_v28 }
  0x81   :  { %v979_v34 = vmul.f32 %v2245_v26, %v2252_v28  ;;  %v1139_v35 = vmul.f32 %v2250_v27, %v2252_v28  ;;  %v1299_v51 = vmul.f32 %v2280_v39, %v2252_v28 }
  0x82   :  { %v2269_v36 = vadd.f32 %v339_v30, %v2254_v29  ;;  %v2272_v37 = vadd.f32 %v499_v31, %v2254_v29  ;;  %v2275_v38 = vadd.f32 %v659_v32, %v2254_v29  ;;  %v2285_v41 = vadd.f32 %v819_v33, %v2254_v29 }
  0x83   :  { %v2282_v40 = vpop.permute.xlu0 %63  ;;  %v2288_v42 = vadd.f32 %v979_v34, %v2254_v29  ;;  %v2291_v43 = vadd.f32 %v1139_v35, %v2254_v29  ;;  %v2330_v59 = vadd.f32 %v1299_v51, %v2254_v29 }
  0x84   :  { %2824 = vst [vmem:[#allocation5_spill] sm:$0xff] %v2285_v41  ;;  %v2293_v44 = vpop.permute.xlu1 %111  ;;  %v340_v45 = vmul.f32 %v2225_v22, %v2282_v40  ;;  %v500_v46 = vmul.f32 %v2230_v23, %v2282_v40  ;;  %v660_v47 = vmul.f32 %v2235_v24, %v2282_v40  ;;  %v820_v48 = vmul.f32 %v2240_v25, %v2282_v40 }
  0x85   :  { %2825 = vst [vmem:[#allocation6_spill] sm:$0xff] %v2288_v42  ;;  %2826 = vst [vmem:[#allocation7_spill] sm:$0xff] %v2291_v43  ;;  %v980_v49 = vmul.f32 %v2245_v26, %v2282_v40  ;;  %v1140_v50 = vmul.f32 %v2250_v27, %v2282_v40 }
  0x86   :  { %v2310_v52 = vadd.f32 %v340_v45, %v2293_v44  ;;  %v2313_v53 = vadd.f32 %v500_v46, %v2293_v44  ;;  %v2316_v54 = vadd.f32 %v660_v47, %v2293_v44  ;;  %v2321_v56 = vadd.f32 %v820_v48, %v2293_v44  ;;  %2830 = vst [vmem:[#allocation11_spill] sm:$0xff] %v2330_v59 }
  0x87   :  { %v2318_v55 = vpop.permute.xlu0 %38  ;;  %v2324_v57 = vadd.f32 %v980_v49, %v2293_v44  ;;  %v2327_v58 = vadd.f32 %v1140_v50, %v2293_v44 }
  0x88   :  { %2827 = vst [vmem:[#allocation8_spill] sm:$0xff] %v2321_v56  ;;  %v2332_v60 = vpop.permute.xlu1 %43  ;;  %v335_v61 = vmul.f32 %v2225_v22, %v2318_v55  ;;  %v495_v63 = vmul.f32 %v2230_v23, %v2318_v55  ;;  %v655_v5 = vmul.f32 %v2235_v24, %v2318_v55  ;;  %v815_v7 = vmul.f32 %v2240_v25, %v2318_v55 }
  0x89   :  { %2828 = vst [vmem:[#allocation9_spill] sm:$0xff] %v2324_v57  ;;  %2829 = vst [vmem:[#allocation10_spill] sm:$0xff] %v2327_v58  ;;  %v336_v62 = vmul.f32 %v2225_v22, %v2332_v60  ;;  %v496_v1 = vmul.f32 %v2230_v23, %v2332_v60  ;;  %v656_v6 = vmul.f32 %v2235_v24, %v2332_v60 }
  0x8a   :  { %v816_v9 = vmul.f32 %v2240_v25, %v2332_v60  ;;  %v975_v11 = vmul.f32 %v2245_v26, %v2318_v55  ;;  %v976_v12 = vmul.f32 %v2245_v26, %v2332_v60  ;;  %v1135_v13 = vmul.f32 %v2250_v27, %v2318_v55 }
  0x8b   :  { %v2342_v4 = vpop.permute.xlu0 %48  ;;  %v1136_v14 = vmul.f32 %v2250_v27, %v2332_v60  ;;  %v1295_v18 = vmul.f32 %v2280_v39, %v2318_v55 }
  0x8c   :  { %v2352_v10 = vpop.permute.xlu1 %53  ;;  %v337_v15 = vmul.f32 %v2225_v22, %v2342_v4  ;;  %v497_v16 = vmul.f32 %v2230_v23, %v2342_v4  ;;  %v657_v17 = vmul.f32 %v2235_v24, %v2342_v4  ;;  %v817_v30 = vmul.f32 %v2240_v25, %v2342_v4 }
  0x8d   :  { %v338_v19 = vmul.f32 %v2225_v22, %v2352_v10  ;;  %v498_v20 = vmul.f32 %v2230_v23, %v2352_v10  ;;  %v658_v21 = vmul.f32 %v2235_v24, %v2352_v10  ;;  %v818_v32 = vmul.f32 %v2240_v25, %v2352_v10 }
  0x8e   :  { %v977_v33 = vmul.f32 %v2245_v26, %v2342_v4  ;;  %v978_v34 = vmul.f32 %v2245_v26, %v2352_v10  ;;  %v1137_v35 = vmul.f32 %v2250_v27, %v2342_v4  ;;  %v1138_v49 = vmul.f32 %v2250_v27, %v2352_v10 }
  0x8f   :  { %v2378_v31 = vpop.permute.xlu0 %86 }
  0x90   :  { %v2388_v45 = vpop.permute.xlu1 %91  ;;  %v2391_v46 = vadd.f32 %v335_v61, %v2378_v31  ;;  %v2394_v47 = vadd.f32 %v495_v63, %v2378_v31  ;;  %v2397_v48 = vadd.f32 %v655_v5, %v2378_v31  ;;  %v1297_v61 = vmul.f32 %v2280_v39, %v2342_v4 }
  0x91   :  { %v2402_v50 = vadd.f32 %v336_v62, %v2388_v45  ;;  %v2405_v51 = vadd.f32 %v496_v1, %v2388_v45  ;;  %v2408_v59 = vadd.f32 %v656_v6, %v2388_v45  ;;  %v2413_v63 = vadd.f32 %v815_v7, %v2378_v31 }
  0x92   :  { %v2416_v5 = vadd.f32 %v816_v9, %v2388_v45  ;;  %v2419_v58 = vadd.f32 %v975_v11, %v2378_v31  ;;  %v2422_v62 = vadd.f32 %v976_v12, %v2388_v45  ;;  %v2425_v43 = vadd.f32 %v1135_v13, %v2378_v31 }
  0x93   :  { %v97_v1 = vpop.permute.xlu0 %96  ;;  %v2428_v6 = vadd.f32 %v1136_v14, %v2388_v45  ;;  %v2431_v57 = vadd.f32 %v1295_v18, %v2378_v31  ;;  %v1298_v7 = vmul.f32 %v2280_v39, %v2352_v10 }
  0x94   :  { %2831 = vst [vmem:[#allocation12_spill] sm:$0xff] %v2416_v5  ;;  %2832 = vst [vmem:[#allocation13_spill] sm:$0xff] %v2419_v58  ;;  %v2435_v9 = vpop.permute.xlu1 %101  ;;  %v2437_v11 = vadd.f32 %v337_v15, %v97_v1  ;;  %v2439_v42 = vadd.f32 %v497_v16, %v97_v1  ;;  %v2441_v12 = vadd.f32 %v657_v17, %v97_v1 }
  0x95   :  { %2833 = vst [vmem:[#allocation14_spill] sm:$0xff] %v2422_v62  ;;  %2834 = vst [vmem:[#allocation15_spill] sm:$0xff] %v2425_v43  ;;  %v2444_v13 = vadd.f32 %v338_v19, %v2435_v9  ;;  %v2447_v14 = vadd.f32 %v498_v20, %v2435_v9  ;;  %v2450_v18 = vadd.f32 %v658_v21, %v2435_v9 }
  0x96   :  { %2835 = vst [vmem:[#allocation16_spill] sm:$0xff] %v2428_v6  ;;  %2836 = vst [vmem:[#allocation17_spill] sm:$0xff] %v2431_v57  ;;  %v1296_v57 = vmul.f32 %v2280_v39, %v2332_v60  ;;  %v2454_v6 = vadd.f32 %v817_v30, %v97_v1  ;;  %v2457_v15 = vadd.f32 %v818_v32, %v2435_v9 }
  0x97   :  { %v2459_v16 = vadd.f32 %v977_v33, %v97_v1  ;;  %v2462_v17 = vadd.f32 %v978_v34, %v2435_v9  ;;  %v2464_v19 = vpop.permute.xlu0 %68  ;;  %v2466_v20 = vadd.f32 %v1137_v35, %v97_v1  ;;  %v2469_v21 = vadd.f32 %v1138_v49, %v2435_v9 }
  0x98   :  { %v2471_v43 = vadd.f32 %v1297_v61, %v97_v1  ;;  %v2474_v30 = vadd.f32 %v1298_v7, %v2435_v9  ;;  %v2476_v62 = vpop.permute.xlu1 %73  ;;  %v341_v32 = vmul.f32 %v2225_v22, %v2464_v19  ;;  %v501_v33 = vmul.f32 %v2230_v23, %v2464_v19 }
  0x99   :  { %2837 = vst [vmem:[#allocation18_spill] sm:$0xff] %v2459_v16  ;;  %2838 = vst [vmem:[#allocation19_spill] sm:$0xff] %v2462_v17  ;;  %v661_v34 = vmul.f32 %v2235_v24, %v2464_v19  ;;  %v342_v35 = vmul.f32 %v2225_v22, %v2476_v62  ;;  %v502_v49 = vmul.f32 %v2230_v23, %v2476_v62 }
  0x9a   :  { %2839 = vst [vmem:[#allocation20_spill] sm:$0xff] %v2466_v20  ;;  %2840 = vst [vmem:[#allocation21_spill] sm:$0xff] %v2469_v21  ;;  %v662_v61 = vmul.f32 %v2235_v24, %v2476_v62  ;;  %v821_v7 = vmul.f32 %v2240_v25, %v2464_v19  ;;  %v982_v21 = vmul.f32 %v2245_v26, %v2476_v62 }
  0x9b   :  { %2841 = vst [vmem:[#allocation22_spill] sm:$0xff] %v2471_v43  ;;  %2842 = vst [vmem:[#allocation23_spill] sm:$0xff] %v2474_v30  ;;  %v822_v30 = vmul.f32 %v2240_v25, %v2476_v62  ;;  %v981_v43 = vmul.f32 %v2245_v26, %v2464_v19  ;;  %v2498_v20 = vpop.permute.xlu0 %116  ;;  %v1141_v22 = vmul.f32 %v2250_v27, %v2464_v19 }
  0x9c   :  { %v1142_v23 = vmul.f32 %v2250_v27, %v2476_v62  ;;  %v2505_v24 = vadd.f32 %v1296_v57, %v2388_v45  ;;  %v1301_v25 = vmul.f32 %v2280_v39, %v2464_v19  ;;  %v122_v17 = vpop.permute.xlu1 %121  ;;  %v2510_v58 = vadd.f32 %v341_v32, %v2498_v20 }
  0x9d   :  { %v2513_v26 = vadd.f32 %v501_v33, %v2498_v20  ;;  %v2516_v16 = vadd.f32 %v661_v34, %v2498_v20  ;;  %v2518_v56 = vadd.f32 %v342_v35, %v122_v17  ;;  %v2520_v41 = vadd.f32 %v502_v49, %v122_v17 }
  0x9e   :  { %2843 = vst [vmem:[#allocation24_spill] sm:$0xff] %v2505_v24  ;;  %v2522_v27 = vadd.f32 %v662_v61, %v122_v17  ;;  %v2525_v57 = vadd.f32 %v821_v7, %v2498_v20  ;;  %v2527_v24 = vadd.f32 %v822_v30, %v122_v17  ;;  %v2530_v32 = vadd.f32 %v981_v43, %v2498_v20 }
  0x9f   :  { %v2532_v5 = vadd.f32 %v982_v21, %v122_v17  ;;  %v2535_v33 = vadd.f32 %v1141_v22, %v2498_v20  ;;  %v2537_v34 = vadd.f32 %v1142_v23, %v122_v17  ;;  %v2540_v35 = vadd.f32 %v1301_v25, %v2498_v20  ;;  %v1518_v21 = vld [vmem:[%s2816_s0] ss:$0 sm:$0xff] }
  0xa0   :  { %2844 = vst [vmem:[#allocation25_spill] sm:$0xff] %v2525_v57  ;;  %2845 = vst [vmem:[#allocation26_spill] sm:$0xff] %v2527_v24  ;;  %v1302_v49 = vmul.f32 %v2280_v39, %v2476_v62  ;;  %v1300_v30 = vmul.f32 %v2280_v39, %v2282_v40  ;;  %v145_v7 = vmul.f32 %v1518_v21, %v2342_v4 }
  0xa1   :  { %2846 = vst [vmem:[#allocation27_spill] sm:$0xff] %v2530_v32  ;;  %2847 = vst [vmem:[#allocation28_spill] sm:$0xff] %v2532_v5  ;;  %v143_v23 = vmul.f32 %v1518_v21, %v2318_v55 }
  0xa2   :  { %2848 = vst [vmem:[#allocation29_spill] sm:$0xff] %v2535_v33  ;;  %2849 = vst [vmem:[#allocation30_spill] sm:$0xff] %v2537_v34  ;;  %v2546_v61 = vadd.f32 %v1302_v49, %v122_v17  ;;  %v2549_v43 = vadd.f32 %v1300_v30, %v2293_v44  ;;  %v146_v34 = vmul.f32 %v1518_v21, %v2352_v10 }
  0xa3   :  { %2850 = vst [vmem:[#allocation31_spill] sm:$0xff] %v2540_v35  ;;  %v153_v35 = vadd.f32 %v145_v7, %v97_v1  ;;  %v151_v39 = vadd.f32 %v143_v23, %v2378_v31  ;;  %v148_v10 = vmul.f32 %v1518_v21, %v2282_v40 }
  0xa4   :  { %2851 = vst [vmem:[#allocation32_spill] sm:$0xff] %v2546_v61  ;;  %2852 = vst [vmem:[#allocation33_spill] sm:$0xff] %v2549_v43  ;;  %v144_v61 = vmul.f32 %v1518_v21, %v2332_v60  ;;  %v147_v43 = vmul.f32 %v1518_v21, %v2252_v28  ;;  %v154_v32 = vadd.f32 %v146_v34, %v2435_v9 }
  0xa6   :  { %v152_v4 = vadd.f32 %v144_v61, %v2388_v45  ;;  %v155_v1 = vadd.f32 %v147_v43, %v2254_v29  ;;  %v149_v29 = vmul.f32 %v1518_v21, %v2464_v19 }
  0xa8   :  { %v157_v40 = vadd.f32 %v149_v29, %v2498_v20 }
  0xc5   :  { %v1689_v22 = vpop.f32.mrf.mxu0 }
  0xc6   :  { %v259_v30 = vadd.f32 %v1689_v22, %v153_v35 }
  0xc7   :  { %v226_v25 = vpop.f32.mrf.mxu0 }
  0xc8   :  { %v257_v33 = vadd.f32 %v226_v25, %v151_v39  ;;  %v1529_v55 = vmul.f32 -1.442695, %v259_v30  ;;  %v156_v25 = vadd.f32 %v148_v10, %v2293_v44 }
  0xc9   :  { %v1690_v49 = vpop.f32.mrf.mxu0 }
  0xca   :  { %v260_v57 = vadd.f32 %v1690_v49, %v154_v32  ;;  %v1527_v31 = vmul.f32 -1.442695, %v257_v33  ;;  %1781 = vpow2.f32 %v1529_v55 }
  0xcb   :  { %v229_v5 = vpop.f32.mrf.mxu0 }
  0xcc   :  { %v258_v7 = vadd.f32 %v229_v5, %v152_v4  ;;  %v1530_v28 = vmul.f32 -1.442695, %v260_v57  ;;  %1783 = vpow2.f32 %v1527_v31  ;;  %v150_v5 = vmul.f32 %v1518_v21, %v2476_v62 }
  0xcd   :  { %v1693_v24 = vpop.f32.mrf.mxu0 }
  0xce   :  { %v1528_v9 = vmul.f32 -1.442695, %v258_v7  ;;  %v263_v33 = vadd.f32 %v1693_v24, %v157_v40  ;;  %v158_v61 = vadd.f32 %v150_v5, %v122_v17 }
  0xcf   :  { %v242_v23 = vpop.f32.mrf.mxu0 }
  0xd0   :  { %v261_v60 = vadd.f32 %v242_v23, %v155_v1  ;;  %v1533_v39 = vmul.f32 -1.442695, %v263_v33 }
  0xd1   :  { %v1694_v35 = vpop.f32.mrf.mxu0 }
  0xd2   :  { %v1531_v22 = vmul.f32 -1.442695, %v261_v60  ;;  %v264_v49 = vadd.f32 %v1694_v35, %v158_v61 }
  0xd3   :  { %v245_v45 = vpop.f32.mrf.mxu0 }
  0xd4   :  { %1785 = vpow2.f32 %v1531_v22  ;;  %v262_v34 = vadd.f32 %v245_v45, %v156_v25  ;;  %v1534_v19 = vmul.f32 -1.442695, %v264_v49 }
  0xd5   :  { %1787 = vpow2.f32 %v1530_v28 }
  0xd6   :  { %v1532_v32 = vmul.f32 -1.442695, %v262_v34  ;;  %1789 = vpow2.f32 %v1528_v9 }
  0xd7   :  { %v1782_v57 = vpop.eup %1781 }
  0xd8   :  { %1791 = vpow2.f32 %v1532_v32  ;;  %v291_v30 = vadd.f32 1.0, %v1782_v57 }
  0xd9   :  { %v1784_v43 = vpop.eup %1783 }
  0xda   :  { %v289_v1 = vadd.f32 1.0, %v1784_v43 }
  0xe1   :  { %v1786_v44 = vpop.eup %1785 }
  0xe2   :  { %v293_v4 = vadd.f32 1.0, %v1786_v44  ;;  %v1788_v55 = vpop.eup %1787 }
  0xe3   :  { %v1790_v10 = vpop.eup %1789  ;;  %v292_v20 = vadd.f32 1.0, %v1788_v55 }
  0xe4   :  { %1793 = vrcp.f32 %v293_v4  ;;  %v290_v62 = vadd.f32 1.0, %v1790_v10 }
  0xe5   :  { %v1792_v31 = vpop.eup %1791  ;;  %1795 = vpow2.f32 %v1533_v39 }
  0xe6   :  { %1797 = vrcp.f32 %v291_v30  ;;  %v294_v7 = vadd.f32 1.0, %v1792_v31 }
  0xe7   :  { %1799 = vrcp.f32 %v289_v1 }
  0xe8   :  { %1801 = vrcp.f32 %v294_v7 }
  0xe9   :  { %1803 = vpow2.f32 %v1534_v19 }
  0xea   :  { %1805 = vrcp.f32 %v292_v20 }
  0xeb   :  { %1807 = vrcp.f32 %v290_v62 }
  0xf1   :  { %v1794_v17 = vpop.eup %1793 }
  0xf2   :  { %v1796_v24 = vpop.eup %1795  ;;  %v313_v21 = vmul.f32 2.0, %v1794_v17 }
  0xf3   :  { %v1798_v23 = vpop.eup %1797  ;;  %v295_v32 = vadd.f32 1.0, %v1796_v24 }
  0xf4   :  { %v1800_v60 = vpop.eup %1799  ;;  %v1535_v35 = vadd.f32 -1.0, %v313_v21  ;;  %v317_v25 = vmul.f32 0.0, %v1798_v23 }
  0xf5   :  { %v1802_v28 = vpop.eup %1801  ;;  %1809 = vrcp.f32 %v295_v32 }
  0xf6   :  { %v1804_v22 = vpop.eup %1803  ;;  %v319_v9 = vmul.f32 %v1800_v60, %v1535_v35  ;;  %v314_v45 = vmul.f32 2.0, %v1802_v28 }
  0xf7   :  { %v1806_v34 = vpop.eup %1805  ;;  %v296_v33 = vadd.f32 1.0, %v1804_v22 }
  0xf8   :  { %v2568_v29 = vadd.f32 %v319_v9, %v317_v25  ;;  %v1536_v40 = vadd.f32 -1.0, %v314_v45  ;;  %v1808_v5 = vpop.eup %1807  ;;  %v318_v57 = vmul.f32 0.0, %v1806_v34 }
  0xfa   :  { %v320_v61 = vmul.f32 %v1808_v5, %v1536_v40  ;;  %1811 = vtanh.f32 %v2568_v29 }
  0xfb   :  { %1813 = vrcp.f32 %v296_v33 }
  0xfc   :  { %v2571_v43 = vadd.f32 %v320_v61, %v318_v57 }
  0xfe   :  { %1815 = vtanh.f32 %v2571_v43 }
 0x102   :  { %v1810_v44 = vpop.eup %1809 }
 0x107   :  { %v1812_v39 = vpop.eup %1811 }
 0x108   :  { %v1814_v49 = vpop.eup %1813  ;;  %v2574_v4 = vmul.f32 %v1812_v39, %v1810_v44 }
 0x10b   :  { %v1816_v30 = vpop.eup %1815 }
 0x10c   :  { %v2576_v55 = vmul.f32 %v1816_v30, %v1814_v49 }
 0x10e   :  { %v351_v1 = vpack.c.bf16 %v2576_v55, %v2574_v4 }
 0x110   :  { %1695 = vmatprep.subr.bf16.mxu1 %v351_v1 }
 0x111   :  { %1696 = vmatpush3.bf16.msra.mxu1 %v351_v1 }
 0x114   :  { %1698 = vmatmul.mubr.msk.bf16.vlgmr.msra.gmra.mxu1 %vm179_vm0, %v2147_v2 }
 0x115   :  { %1701 = vmatprep.mubr.msk.bf16.mxu1 %vm179_vm0, %v2154_v3 }
 0x11c   :  { %1702 = vmatmul.mubr.msk.bf16.gmra.mxu1 %vm179_vm0, %v2177_v8 }
 0x11d   :  { %1717 = vmatprep.mubr.msk.bf16.mxu1 %vm179_vm0, %v2142_v0 }
 0x1d4   :  { %v1699_v10 = vpop.f32.mrf.mxu1 }
 0x1d5   :  { %v419_v20 = vadd.f32 %v1699_v10, %v2437_v11 }
 0x1d6   :  { %v386_v31 = vpop.f32.mrf.mxu1 }
 0x1d7   :  { %v417_v7 = vadd.f32 %v386_v31, %v2391_v46  ;;  %v1544_v24 = vmul.f32 -1.442695, %v419_v20 }
 0x1d8   :  { %v1700_v19 = vpop.f32.mrf.mxu1 }
 0x1d9   :  { %v420_v21 = vadd.f32 %v1700_v19, %v2444_v13  ;;  %v1542_v23 = vmul.f32 -1.442695, %v417_v7  ;;  %1817 = vpow2.f32 %v1544_v24 }
 0x1da   :  { %v389_v62 = vpop.f32.mrf.mxu1 }
 0x1db   :  { %v418_v60 = vadd.f32 %v389_v62, %v2402_v50  ;;  %v1545_v25 = vmul.f32 -1.442695, %v420_v21  ;;  %1819 = vpow2.f32 %v1542_v23  ;;  %v134_v21 = vlaneseq }
 0x1dc   :  { %v1703_v17 = vpop.f32.mrf.mxu1 }
 0x1dd   :  { %v1543_v45 = vmul.f32 -1.442695, %v418_v60  ;;  %v423_v13 = vadd.f32 %v1703_v17, %v2510_v58 }
 0x1de   :  { %v402_v35 = vpop.f32.mrf.mxu1 }
 0x1df   :  { %v421_v28 = vadd.f32 %v402_v35, %v2269_v36  ;;  %v1548_v36 = vmul.f32 -1.442695, %v423_v13  ;;  %v132_v13 = vld [vmem:[%s2817_s1] sm:$0x1] }
 0x1e0   :  { %v1704_v22 = vpop.f32.mrf.mxu1 }
 0x1e1   :  { %v1546_v9 = vmul.f32 -1.442695, %v421_v28  ;;  %v424_v5 = vadd.f32 %v1704_v22, %v2518_v56 }
 0x1e2   :  { %v405_v11 = vpop.f32.mrf.mxu1 }
 0x1e3   :  { %1821 = vpow2.f32 %v1546_v9  ;;  %v422_v46 = vadd.f32 %v405_v11, %v2310_v52  ;;  %v1549_v52 = vmul.f32 -1.442695, %v424_v5  ;;  %v135_v11 = vshrl.u32 %v134_v21, 7 }
 0x1e4   :  { %1823 = vpow2.f32 %v1545_v25 }
 0x1e5   :  { %v1547_v34 = vmul.f32 -1.442695, %v422_v46  ;;  %1825 = vpow2.f32 %v1543_v45 }
 0x1e6   :  { %v1818_v50 = vpop.eup %1817 }
 0x1e7   :  { %1827 = vpow2.f32 %v1547_v34  ;;  %v451_v33 = vadd.f32 1.0, %v1818_v50  ;;  %v1517_v50 = vadd.s32 4294967295, %v132_v13 }
 0x1e8   :  { %v1820_v32 = vpop.eup %1819 }
 0x1e9   :  { %v449_v44 = vadd.f32 1.0, %v1820_v32  ;;  %v136_v32 = vsub.s32 0, %v135_v11 }
 0x1f0   :  { %v1822_v40 = vpop.eup %1821 }
 0x1f1   :  { %v453_v57 = vadd.f32 1.0, %v1822_v40  ;;  %v1824_v61 = vpop.eup %1823  ;;  %v2607_v40 = vrot.slane %v1517_v50, %v136_v32 }
 0x1f2   :  { %v1826_v39 = vpop.eup %1825  ;;  %v452_v30 = vadd.f32 1.0, %v1824_v61 }
 0x1f3   :  { %1829 = vrcp.f32 %v453_v57  ;;  %v450_v58 = vadd.f32 1.0, %v1826_v39  ;;  %vm327_vm1 = vcmp.eq.s32.totalorder %v2607_v40, 0  ;;  %vm487_vm2 = vcmp.eq.s32.totalorder %v2607_v40, 1 }
 0x1f4   :  { %v1828_v49 = vpop.eup %1827  ;;  %1831 = vpow2.f32 %v1548_v36  ;;  %vm647_vm3 = vcmp.eq.s32.totalorder %v2607_v40, 2  ;;  %vm807_vm4 = vcmp.eq.s32.totalorder %v2607_v40, 3  ;;  %vm967_vm5 = vcmp.eq.s32.totalorder %v2607_v40, 4 }
 0x1f5   :  { %1833 = vrcp.f32 %v451_v33  ;;  %v454_v1 = vadd.f32 1.0, %v1828_v49  ;;  %v328_v33 = vsel %vm327_vm1, %v2574_v4, 0.0  ;;  %v329_v49 = vsel %vm327_vm1, %v2576_v55, 0.0 }
 0x1f6   :  { %1835 = vrcp.f32 %v449_v44  ;;  %vm1127_vm6 = vcmp.eq.s32.totalorder %v2607_v40, 5  ;;  %vm1287_vm7 = vcmp.eq.s32.totalorder %v2607_v40, 6  ;;  %vm1447_vm9 = vcmp.eq.s32.totalorder %v2607_v40, 7 }
 0x1f7   :  { %1837 = vrcp.f32 %v454_v1 }
 0x1f8   :  { %1839 = vpow2.f32 %v1549_v52 }
 0x1f9   :  { %1841 = vrcp.f32 %v452_v30 }
 0x1fa   :  { %1843 = vrcp.f32 %v450_v58 }
 0x200   :  { %v1830_v10 = vpop.eup %1829 }
 0x201   :  { %v1832_v56 = vpop.eup %1831  ;;  %v473_v31 = vmul.f32 2.0, %v1830_v10 }
 0x202   :  { %v1834_v19 = vpop.eup %1833  ;;  %v455_v17 = vadd.f32 1.0, %v1832_v56 }
 0x203   :  { %v1836_v20 = vpop.eup %1835  ;;  %v1550_v7 = vadd.f32 -1.0, %v473_v31  ;;  %v477_v23 = vmul.f32 %v1834_v19, %v2568_v29 }
 0x204   :  { %v1838_v62 = vpop.eup %1837  ;;  %1845 = vrcp.f32 %v455_v17 }
 0x205   :  { %v1840_v24 = vpop.eup %1839  ;;  %v479_v60 = vmul.f32 %v1836_v20, %v1550_v7  ;;  %v474_v35 = vmul.f32 2.0, %v1838_v62 }
 0x206   :  { %v1842_v28 = vpop.eup %1841  ;;  %v456_v45 = vadd.f32 1.0, %v1840_v24 }
 0x207   :  { %v2597_v22 = vadd.f32 %v479_v60, %v477_v23  ;;  %v1551_v25 = vadd.f32 -1.0, %v474_v35  ;;  %v1844_v9 = vpop.eup %1843  ;;  %v478_v46 = vmul.f32 %v1842_v28, %v2571_v43 }
 0x209   :  { %1847 = vtanh.f32 %v2597_v22  ;;  %v480_v34 = vmul.f32 %v1844_v9, %v1551_v25 }
 0x20a   :  { %1849 = vrcp.f32 %v456_v45 }
 0x20b   :  { %v2604_v29 = vadd.f32 %v480_v34, %v478_v46 }
 0x20d   :  { %1851 = vtanh.f32 %v2604_v29 }
 0x211   :  { %v1846_v36 = vpop.eup %1845 }
 0x216   :  { %v1848_v5 = vpop.eup %1847 }
 0x217   :  { %v485_v43 = vmul.f32 %v1848_v5, %v1846_v36  ;;  %v1850_v57 = vpop.eup %1849 }
 0x219   :  { %v2612_v61 = vsel %vm487_vm2, %v485_v43, %v328_v33 }
 0x21a   :  { %v1852_v44 = vpop.eup %1851 }
 0x21b   :  { %v486_v39 = vmul.f32 %v1852_v44, %v1850_v57 }
 0x21d   :  { %v2615_v52 = vsel %vm487_vm2, %v486_v39, %v329_v49  ;;  %v511_v30 = vpack.c.bf16 %v486_v39, %v485_v43 }
 0x21f   :  { %1705 = vmatprep.subr.bf16.mxu0 %v511_v30 }
 0x220   :  { %1706 = vmatpush3.bf16.msra.mxu0 %v511_v30 }
 0x223   :  { %1708 = vmatmul.mubr.msk.bf16.vlgmr.msra.gmra.mxu0 %vm179_vm0, %v2147_v2 }
 0x224   :  { %1711 = vmatprep.mubr.msk.bf16.mxu0 %vm179_vm0, %v2154_v3 }
 0x22b   :  { %1712 = vmatmul.mubr.msk.bf16.gmra.mxu0 %vm179_vm0, %v2177_v8 }
 0x22c   :  { %1727 = vmatprep.mubr.msk.bf16.mxu0 %vm179_vm0, %v2142_v0 }
 0x2e3   :  { %v1709_v4 = vpop.f32.mrf.mxu0 }
 0x2e4   :  { %v579_v58 = vadd.f32 %v1709_v4, %v2439_v42 }
 0x2e5   :  { %v546_v1 = vpop.f32.mrf.mxu0 }
 0x2e6   :  { %v577_v10 = vadd.f32 %v546_v1, %v2394_v47  ;;  %v1559_v19 = vmul.f32 -1.442695, %v579_v58 }
 0x2e7   :  { %v1710_v55 = vpop.f32.mrf.mxu0 }
 0x2e8   :  { %v580_v20 = vadd.f32 %v1710_v55, %v2447_v14  ;;  %v1557_v7 = vmul.f32 -1.442695, %v577_v10  ;;  %1853 = vpow2.f32 %v1559_v19 }
 0x2e9   :  { %v549_v56 = vpop.f32.mrf.mxu0 }
 0x2ea   :  { %v578_v62 = vadd.f32 %v549_v56, %v2405_v51  ;;  %v1560_v23 = vmul.f32 -1.442695, %v580_v20  ;;  %1855 = vpow2.f32 %v1557_v7 }
 0x2eb   :  { %v1713_v31 = vpop.f32.mrf.mxu0 }
 0x2ec   :  { %v1558_v35 = vmul.f32 -1.442695, %v578_v62  ;;  %v583_v14 = vadd.f32 %v1713_v31, %v2513_v26 }
 0x2ed   :  { %v562_v17 = vpop.f32.mrf.mxu0 }
 0x2ee   :  { %v581_v24 = vadd.f32 %v562_v17, %v2272_v37  ;;  %v1563_v37 = vmul.f32 -1.442695, %v583_v14 }
 0x2ef   :  { %v1714_v21 = vpop.f32.mrf.mxu0 }
 0x2f0   :  { %v1561_v60 = vmul.f32 -1.442695, %v581_v24  ;;  %v584_v45 = vadd.f32 %v1714_v21, %v2520_v41 }
 0x2f1   :  { %v565_v42 = vpop.f32.mrf.mxu0 }
 0x2f2   :  { %1857 = vpow2.f32 %v1561_v60  ;;  %v582_v47 = vadd.f32 %v565_v42, %v2313_v53  ;;  %v1564_v53 = vmul.f32 -1.442695, %v584_v45 }
 0x2f3   :  { %1859 = vpow2.f32 %v1560_v23 }
 0x2f4   :  { %v1562_v28 = vmul.f32 -1.442695, %v582_v47  ;;  %1861 = vpow2.f32 %v1558_v35 }
 0x2f5   :  { %v1854_v51 = vpop.eup %1853 }
 0x2f6   :  { %1863 = vpow2.f32 %v1562_v28  ;;  %v611_v11 = vadd.f32 1.0, %v1854_v51 }
 0x2f7   :  { %v1856_v25 = vpop.eup %1855 }
 0x2f8   :  { %v609_v13 = vadd.f32 1.0, %v1856_v25 }
 0x2ff   :  { %v1858_v9 = vpop.eup %1857 }
 0x300   :  { %v613_v46 = vadd.f32 1.0, %v1858_v9  ;;  %v1860_v34 = vpop.eup %1859 }
 0x301   :  { %v1862_v50 = vpop.eup %1861  ;;  %v612_v36 = vadd.f32 1.0, %v1860_v34 }
 0x302   :  { %1865 = vrcp.f32 %v613_v46  ;;  %v610_v26 = vadd.f32 1.0, %v1862_v50 }
 0x303   :  { %v1864_v32 = vpop.eup %1863  ;;  %1867 = vpow2.f32 %v1563_v37 }
 0x304   :  { %1869 = vrcp.f32 %v611_v11  ;;  %v614_v5 = vadd.f32 1.0, %v1864_v32 }
 0x305   :  { %1871 = vrcp.f32 %v609_v13 }
 0x306   :  { %1873 = vrcp.f32 %v614_v5 }
 0x307   :  { %1875 = vpow2.f32 %v1564_v53 }
 0x308   :  { %1877 = vrcp.f32 %v612_v36 }
 0x309   :  { %1879 = vrcp.f32 %v610_v26 }
 0x30f   :  { %v1866_v43 = vpop.eup %1865 }
 0x310   :  { %v1868_v41 = vpop.eup %1867  ;;  %v633_v33 = vmul.f32 2.0, %v1866_v43 }
 0x311   :  { %v1870_v57 = vpop.eup %1869  ;;  %v615_v30 = vadd.f32 1.0, %v1868_v41 }
 0x312   :  { %v1872_v44 = vpop.eup %1871  ;;  %v1565_v39 = vadd.f32 -1.0, %v633_v33  ;;  %v637_v1 = vmul.f32 %v1870_v57, %v2597_v22 }
 0x313   :  { %v1874_v49 = vpop.eup %1873  ;;  %1881 = vrcp.f32 %v615_v30 }
 0x314   :  { %v1876_v4 = vpop.eup %1875  ;;  %v639_v55 = vmul.f32 %v1872_v44, %v1565_v39  ;;  %v634_v58 = vmul.f32 2.0, %v1874_v49 }
 0x315   :  { %v1878_v10 = vpop.eup %1877  ;;  %v616_v20 = vadd.f32 1.0, %v1876_v4 }
 0x316   :  { %v2634_v56 = vadd.f32 %v639_v55, %v637_v1  ;;  %v1566_v31 = vadd.f32 -1.0, %v634_v58  ;;  %v1880_v19 = vpop.eup %1879  ;;  %v638_v7 = vmul.f32 %v1878_v10, %v2604_v29 }
 0x318   :  { %1883 = vtanh.f32 %v2634_v56  ;;  %v640_v62 = vmul.f32 %v1880_v19, %v1566_v31 }
 0x319   :  { %1885 = vrcp.f32 %v616_v20 }
 0x31a   :  { %v2638_v17 = vadd.f32 %v640_v62, %v638_v7 }
 0x31c   :  { %1887 = vtanh.f32 %v2638_v17 }
 0x320   :  { %v1882_v22 = vpop.eup %1881 }
 0x325   :  { %v1884_v24 = vpop.eup %1883 }
 0x326   :  { %v645_v21 = vmul.f32 %v1884_v24, %v1882_v22  ;;  %v1886_v23 = vpop.eup %1885 }
 0x328   :  { %v2643_v60 = vsel %vm647_vm3, %v645_v21, %v2612_v61 }
 0x329   :  { %v1888_v35 = vpop.eup %1887 }
 0x32a   :  { %v646_v42 = vmul.f32 %v1888_v35, %v1886_v23 }
 0x32c   :  { %v2646_v47 = vsel %vm647_vm3, %v646_v42, %v2615_v52  ;;  %v671_v29 = vpack.c.bf16 %v646_v42, %v645_v21 }
 0x32e   :  { %1715 = vmatprep.subr.bf16.mxu1 %v671_v29 }
 0x32f   :  { %1716 = vmatpush3.bf16.msra.mxu1 %v671_v29 }
 0x332   :  { %1718 = vmatmul.mubr.msk.bf16.vlgmr.msra.gmra.mxu1 %vm179_vm0, %v2147_v2 }
 0x333   :  { %1721 = vmatprep.mubr.msk.bf16.mxu1 %vm179_vm0, %v2154_v3 }
 0x33a   :  { %1722 = vmatmul.mubr.msk.bf16.gmra.mxu1 %vm179_vm0, %v2177_v8 }
 0x33b   :  { %1737 = vmatprep.mubr.msk.bf16.mxu1 %vm179_vm0, %v2142_v0 }
 0x3f2   :  { %v1719_v61 = vpop.f32.mrf.mxu1 }
 0x3f3   :  { %v739_v52 = vadd.f32 %v1719_v61, %v2441_v12 }
 0x3f4   :  { %v706_v28 = vpop.f32.mrf.mxu1 }
 0x3f5   :  { %v737_v51 = vadd.f32 %v706_v28, %v2397_v48  ;;  %v1574_v37 = vmul.f32 -1.442695, %v739_v52 }
 0x3f6   :  { %v1720_v14 = vpop.f32.mrf.mxu1 }
 0x3f7   :  { %v740_v2 = vadd.f32 %v1720_v14, %v2450_v18  ;;  %v1572_v45 = vmul.f32 -1.442695, %v737_v51  ;;  %1889 = vpow2.f32 %v1574_v37  ;;  %v2682_v37 = vld [vmem:[%s2819_s3 + $0x8] sm:$0xff]  }
 0x3f8   :  { %v709_v25 = vpop.f32.mrf.mxu1 }
 0x3f9   :  { %v738_v3 = vadd.f32 %v709_v25, %v2408_v59  ;;  %v1575_v0 = vmul.f32 -1.442695, %v740_v2  ;;  %1891 = vpow2.f32 %v1572_v45  ;;  %v2703_v2 = vld [vmem:[%s2819_s3] sm:$0xff]  }
 0x3fa   :  { %v1723_v9 = vpop.f32.mrf.mxu1 }
 0x3fb   :  { %v1573_v13 = vmul.f32 -1.442695, %v738_v3  ;;  %v743_v18 = vadd.f32 %v1723_v9, %v2516_v16 }
 0x3fc   :  { %v722_v11 = vpop.f32.mrf.mxu1 }
 0x3fd   :  { %v741_v8 = vadd.f32 %v722_v11, %v2275_v38  ;;  %v1578_v38 = vmul.f32 -1.442695, %v743_v18 }
 0x3fe   :  { %v1724_v46 = vpop.f32.mrf.mxu1 }
 0x3ff   :  { %v1576_v34 = vmul.f32 -1.442695, %v741_v8  ;;  %v744_v36 = vadd.f32 %v1724_v46, %v2522_v27 }
 0x400   :  { %v725_v12 = vpop.f32.mrf.mxu1 }
 0x401   :  { %1893 = vpow2.f32 %v1576_v34  ;;  %v742_v48 = vadd.f32 %v725_v12, %v2316_v54  ;;  %v1579_v54 = vmul.f32 -1.442695, %v744_v36 }
 0x402   :  { %1895 = vpow2.f32 %v1575_v0 }
 0x403   :  { %v1577_v50 = vmul.f32 -1.442695, %v742_v48  ;;  %1897 = vpow2.f32 %v1573_v13 }
 0x404   :  { %v1890_v59 = vpop.eup %1889 }
 0x405   :  { %1899 = vpow2.f32 %v1577_v50  ;;  %v771_v5 = vadd.f32 1.0, %v1890_v59  ;;  %v2853_v50 = vld [vmem:[#allocation12_spill] sm:$0xff] }
 0x406   :  { %v1892_v32 = vpop.eup %1891 }
 0x407   :  { %v769_v41 = vadd.f32 1.0, %v1892_v32  ;;  %v2854_v32 = vld [vmem:[#allocation5_spill] sm:$0xff] }
 0x40e   :  { %v1894_v53 = vpop.eup %1893 }
 0x40f   :  { %v773_v26 = vadd.f32 1.0, %v1894_v53  ;;  %v1896_v43 = vpop.eup %1895 }
 0x410   :  { %v1898_v33 = vpop.eup %1897  ;;  %v772_v44 = vadd.f32 1.0, %v1896_v43 }
 0x411   :  { %1901 = vrcp.f32 %v773_v26  ;;  %v770_v16 = vadd.f32 1.0, %v1898_v33 }
 0x412   :  { %v1900_v57 = vpop.eup %1899  ;;  %1903 = vpow2.f32 %v1578_v38 }
 0x413   :  { %1905 = vrcp.f32 %v771_v5  ;;  %v774_v39 = vadd.f32 1.0, %v1900_v57 }
 0x414   :  { %1907 = vrcp.f32 %v769_v41 }
 0x415   :  { %1909 = vrcp.f32 %v774_v39 }
 0x416   :  { %1911 = vpow2.f32 %v1579_v54 }
 0x417   :  { %1913 = vrcp.f32 %v772_v44 }
 0x418   :  { %1915 = vrcp.f32 %v770_v16  ;;  %v2857_v16 = vld [vmem:[#allocation26_spill] sm:$0xff] }
 0x41e   :  { %v1902_v49 = vpop.eup %1901 }
 0x41f   :  { %v1904_v27 = vpop.eup %1903  ;;  %v793_v30 = vmul.f32 2.0, %v1902_v49 }
 0x420   :  { %v1906_v4 = vpop.eup %1905  ;;  %v775_v10 = vadd.f32 1.0, %v1904_v27 }
 0x421   :  { %v1908_v1 = vpop.eup %1907  ;;  %v1580_v55 = vadd.f32 -1.0, %v793_v30  ;;  %v797_v19 = vmul.f32 %v1906_v4, %v2634_v56 }
 0x422   :  { %v1910_v58 = vpop.eup %1909  ;;  %1917 = vrcp.f32 %v775_v10 }
 0x423   :  { %v1912_v31 = vpop.eup %1911  ;;  %v799_v20 = vmul.f32 %v1908_v1, %v1580_v55  ;;  %v794_v7 = vmul.f32 2.0, %v1910_v58 }
 0x424   :  { %v1914_v62 = vpop.eup %1913  ;;  %v776_v23 = vadd.f32 1.0, %v1912_v31 }
 0x425   :  { %v2665_v22 = vadd.f32 %v799_v20, %v797_v19  ;;  %v1581_v24 = vadd.f32 -1.0, %v794_v7  ;;  %v1916_v21 = vpop.eup %1915  ;;  %v798_v35 = vmul.f32 %v1914_v62, %v2638_v17 }
 0x427   :  { %1919 = vtanh.f32 %v2665_v22  ;;  %v800_v42 = vmul.f32 %v1916_v21, %v1581_v24 }
 0x428   :  { %1921 = vrcp.f32 %v776_v23 }
 0x429   :  { %v2669_v29 = vadd.f32 %v800_v42, %v798_v35 }
 0x42b   :  { %1923 = vtanh.f32 %v2669_v29 }
 0x42f   :  { %v1918_v56 = vpop.eup %1917 }
 0x434   :  { %v1920_v61 = vpop.eup %1919 }
 0x435   :  { %v805_v28 = vmul.f32 %v1920_v61, %v1918_v56  ;;  %v1922_v14 = vpop.eup %1921 }
 0x437   :  { %v2674_v52 = vsel %vm807_vm4, %v805_v28, %v2643_v60  ;;  %v2689_v60 = vld [vmem:[%s2819_s3 + $0x10] sm:$0xff]  }
 0x438   :  { %v1924_v51 = vpop.eup %1923 }
 0x439   :  { %v806_v25 = vmul.f32 %v1924_v51, %v1922_v14 }
 0x43b   :  { %v2677_v9 = vsel %vm807_vm4, %v806_v25, %v2646_v47  ;;  %v831_v17 = vpack.c.bf16 %v806_v25, %v805_v28  ;;  %v2696_v47 = vld [vmem:[%s2819_s3 + $0x18] sm:$0xff]  }
 0x43d   :  { %1725 = vmatprep.subr.bf16.mxu0 %v831_v17 }
 0x43e   :  { %1726 = vmatpush3.bf16.msra.mxu0 %v831_v17 }
 0x441   :  { %1728 = vmatmul.mubr.msk.bf16.vlgmr.msra.gmra.mxu0 %vm179_vm0, %v2682_v37 }
 0x442   :  { %1731 = vmatprep.mubr.msk.bf16.mxu0 %vm179_vm0, %v2689_v60 }
 0x449   :  { %1732 = vmatmul.mubr.msk.bf16.gmra.mxu0 %vm179_vm0, %v2696_v47 }
 0x44a   :  { %1747 = vmatprep.mubr.msk.bf16.mxu0 %vm179_vm0, %v2703_v2 }
 0x501   :  { %v1729_v45 = vpop.f32.mrf.mxu0 }
 0x502   :  { %v899_v8 = vadd.f32 %v1729_v45, %v2454_v6 }
 0x503   :  { %v866_v3 = vpop.f32.mrf.mxu0 }
 0x504   :  { %v897_v46 = vadd.f32 %v866_v3, %v2413_v63  ;;  %v1589_v13 = vmul.f32 -1.442695, %v899_v8  ;;  %v2855_v63 = vld [vmem:[#allocation8_spill] sm:$0xff] }
 0x505   :  { %v1730_v11 = vpop.f32.mrf.mxu0 }
 0x506   :  { %v900_v12 = vadd.f32 %v1730_v11, %v2457_v15  ;;  %v1587_v48 = vmul.f32 -1.442695, %v897_v46  ;;  %1925 = vpow2.f32 %v1589_v13  ;;  %v2856_v15 = vld [vmem:[#allocation25_spill] sm:$0xff] }
 0x507   :  { %v869_v0 = vpop.f32.mrf.mxu0 }
 0x508   :  { %v898_v18 = vadd.f32 %v869_v0, %v2853_v50  ;;  %v1590_v36 = vmul.f32 -1.442695, %v900_v12  ;;  %1927 = vpow2.f32 %v1587_v48 }
 0x509   :  { %v1733_v34 = vpop.f32.mrf.mxu0 }
 0x50a   :  { %v1588_v26 = vmul.f32 -1.442695, %v898_v18  ;;  %v903_v33 = vadd.f32 %v1733_v34, %v2856_v15 }
 0x50b   :  { %v882_v59 = vpop.f32.mrf.mxu0 }
 0x50c   :  { %v901_v53 = vadd.f32 %v882_v59, %v2854_v32  ;;  %v1593_v39 = vmul.f32 -1.442695, %v903_v33  ;;  %v2861_v33 = vld [vmem:[#allocation14_spill] sm:$0xff] }
 0x50d   :  { %v1734_v38 = vpop.f32.mrf.mxu0 }
 0x50e   :  { %v1591_v5 = vmul.f32 -1.442695, %v901_v53  ;;  %v904_v49 = vadd.f32 %v1734_v38, %v2857_v16 }
 0x50f   :  { %v885_v6 = vpop.f32.mrf.mxu0 }
 0x510   :  { %1929 = vpow2.f32 %v1591_v5  ;;  %v902_v43 = vadd.f32 %v885_v6, %v2855_v63  ;;  %v1594_v10 = vmul.f32 -1.442695, %v904_v49 }
 0x511   :  { %1931 = vpow2.f32 %v1590_v36  ;;  %v2859_v36 = vld [vmem:[#allocation13_spill] sm:$0xff] }
 0x512   :  { %v1592_v41 = vmul.f32 -1.442695, %v902_v43  ;;  %1933 = vpow2.f32 %v1588_v26  ;;  %v2860_v43 = vld [vmem:[#allocation19_spill] sm:$0xff] }
 0x513   :  { %v1926_v57 = vpop.eup %1925 }
 0x514   :  { %1935 = vpow2.f32 %v1592_v41  ;;  %v931_v27 = vadd.f32 1.0, %v1926_v57 }
 0x515   :  { %v1928_v54 = vpop.eup %1927 }
 0x516   :  { %v929_v1 = vadd.f32 1.0, %v1928_v54 }
 0x51d   :  { %v1930_v44 = vpop.eup %1929 }
 0x51e   :  { %v933_v30 = vadd.f32 1.0, %v1930_v44  ;;  %v1932_v4 = vpop.eup %1931  ;;  %v2862_v44 = vld [vmem:[#allocation6_spill] sm:$0xff] }
 0x51f   :  { %v1934_v55 = vpop.eup %1933  ;;  %v932_v31 = vadd.f32 1.0, %v1932_v4  ;;  %v2863_v4 = vld [vmem:[#allocation9_spill] sm:$0xff] }
 0x520   :  { %1937 = vrcp.f32 %v933_v30  ;;  %v930_v20 = vadd.f32 1.0, %v1934_v55 }
 0x521   :  { %v1936_v58 = vpop.eup %1935  ;;  %1939 = vpow2.f32 %v1593_v39 }
 0x522   :  { %1941 = vrcp.f32 %v931_v27  ;;  %v934_v19 = vadd.f32 1.0, %v1936_v58  ;;  %v2864_v58 = vld [vmem:[#allocation27_spill] sm:$0xff] }
 0x523   :  { %1943 = vrcp.f32 %v929_v1 }
 0x524   :  { %1945 = vrcp.f32 %v934_v19 }
 0x525   :  { %1947 = vpow2.f32 %v1594_v10 }
 0x526   :  { %1949 = vrcp.f32 %v932_v31 }
 0x527   :  { %1951 = vrcp.f32 %v930_v20 }
 0x52d   :  { %v1938_v7 = vpop.eup %1937 }
 0x52e   :  { %v1940_v62 = vpop.eup %1939  ;;  %v953_v24 = vmul.f32 2.0, %v1938_v7 }
 0x52f   :  { %v1942_v21 = vpop.eup %1941  ;;  %v935_v56 = vadd.f32 1.0, %v1940_v62  ;;  %v2865_v62 = vld [vmem:[#allocation28_spill] sm:$0xff] }
 0x530   :  { %v1944_v23 = vpop.eup %1943  ;;  %v1595_v35 = vadd.f32 -1.0, %v953_v24  ;;  %v957_v28 = vmul.f32 %v1942_v21, %v2665_v22 }
 0x531   :  { %v1946_v42 = vpop.eup %1945  ;;  %1953 = vrcp.f32 %v935_v56 }
 0x532   :  { %v1948_v61 = vpop.eup %1947  ;;  %v959_v14 = vmul.f32 %v1944_v23, %v1595_v35  ;;  %v954_v51 = vmul.f32 2.0, %v1946_v42 }
 0x533   :  { %v1950_v25 = vpop.eup %1949  ;;  %v936_v11 = vadd.f32 1.0, %v1948_v61 }
 0x534   :  { %v2716_v17 = vadd.f32 %v959_v14, %v957_v28  ;;  %v1596_v45 = vadd.f32 -1.0, %v954_v51  ;;  %v1952_v3 = vpop.eup %1951  ;;  %v958_v8 = vmul.f32 %v1950_v25, %v2669_v29 }
 0x536   :  { %1955 = vtanh.f32 %v2716_v17  ;;  %v960_v46 = vmul.f32 %v1952_v3, %v1596_v45 }
 0x537   :  { %1957 = vrcp.f32 %v936_v11 }
 0x538   :  { %v2720_v0 = vadd.f32 %v960_v46, %v958_v8 }
 0x53a   :  { %1959 = vtanh.f32 %v2720_v0 }
 0x53e   :  { %v1954_v22 = vpop.eup %1953 }
 0x543   :  { %v1956_v34 = vpop.eup %1955 }
 0x544   :  { %v965_v13 = vmul.f32 %v1956_v34, %v1954_v22  ;;  %v1958_v12 = vpop.eup %1957 }
 0x546   :  { %v2725_v48 = vsel %vm967_vm5, %v965_v13, %v2674_v52 }
 0x547   :  { %v1960_v50 = vpop.eup %1959 }
 0x548   :  { %v966_v18 = vmul.f32 %v1960_v50, %v1958_v12 }
 0x54a   :  { %v2728_v59 = vsel %vm967_vm5, %v966_v18, %v2677_v9  ;;  %v991_v29 = vpack.c.bf16 %v966_v18, %v965_v13  ;;  %v2858_v9 = vld [vmem:[#allocation18_spill] sm:$0xff] }
 0x54c   :  { %1735 = vmatprep.subr.bf16.mxu1 %v991_v29 }
 0x54d   :  { %1736 = vmatpush3.bf16.msra.mxu1 %v991_v29 }
 0x550   :  { %1738 = vmatmul.mubr.msk.bf16.vlgmr.msra.gmra.mxu1 %vm179_vm0, %v2682_v37 }
 0x551   :  { %1741 = vmatprep.mubr.msk.bf16.mxu1 %vm179_vm0, %v2689_v60 }
 0x558   :  { %1742 = vmatmul.mubr.msk.bf16.gmra.mxu1 %vm179_vm0, %v2696_v47 }
 0x559   :  { %1757 = vmatprep.mubr.msk.bf16.mxu1 %vm179_vm0, %v2703_v2 }
 0x610   :  { %v1739_v52 = vpop.f32.mrf.mxu1 }
 0x611   :  { %v1059_v38 = vadd.f32 %v1739_v52, %v2858_v9 }
 0x612   :  { %v1026_v32 = vpop.f32.mrf.mxu1 }
 0x613   :  { %v1057_v5 = vadd.f32 %v1026_v32, %v2859_v36  ;;  %v1604_v63 = vmul.f32 -1.442695, %v1059_v38 }
 0x614   :  { %v1740_v53 = vpop.f32.mrf.mxu1 }
 0x615   :  { %v1060_v41 = vadd.f32 %v1740_v53, %v2860_v43  ;;  %v1602_v15 = vmul.f32 -1.442695, %v1057_v5  ;;  %1961 = vpow2.f32 %v1604_v63 }
 0x616   :  { %v1029_v26 = vpop.f32.mrf.mxu1 }
 0x617   :  { %v1058_v57 = vadd.f32 %v1029_v26, %v2861_v33  ;;  %v1605_v2 = vmul.f32 -1.442695, %v1060_v41  ;;  %1963 = vpow2.f32 %v1602_v15 }
 0x618   :  { %v1743_v6 = vpop.f32.mrf.mxu1 }
 0x619   :  { %v1603_v27 = vmul.f32 -1.442695, %v1058_v57  ;;  %v1063_v10 = vadd.f32 %v1743_v6, %v2864_v58  ;;  %v2869_v58 = vld [vmem:[#allocation16_spill] sm:$0xff] }
 0x61a   :  { %v1042_v54 = vpop.f32.mrf.mxu1 }
 0x61b   :  { %v1061_v39 = vadd.f32 %v1042_v54, %v2862_v44  ;;  %v1608_v7 = vmul.f32 -1.442695, %v1063_v10 }
 0x61c   :  { %v1744_v16 = vpop.f32.mrf.mxu1 }
 0x61d   :  { %v1606_v49 = vmul.f32 -1.442695, %v1061_v39  ;;  %v1064_v24 = vadd.f32 %v1744_v16, %v2865_v62  ;;  %v2866_v39 = vld [vmem:[#allocation20_spill] sm:$0xff] }
 0x61e   :  { %v1045_v30 = vpop.f32.mrf.mxu1 }
 0x61f   :  { %1965 = vpow2.f32 %v1606_v49  ;;  %v1062_v1 = vadd.f32 %v1045_v30, %v2863_v4  ;;  %v1609_v28 = vmul.f32 -1.442695, %v1064_v24  ;;  %v2868_v4 = vld [vmem:[#allocation21_spill] sm:$0xff] }
 0x620   :  { %1967 = vpow2.f32 %v1605_v2  ;;  %v2867_v2 = vld [vmem:[#allocation15_spill] sm:$0xff] }
 0x621   :  { %v1607_v55 = vmul.f32 -1.442695, %v1062_v1  ;;  %1969 = vpow2.f32 %v1603_v27 }
 0x622   :  { %v1962_v31 = vpop.eup %1961 }
 0x623   :  { %1971 = vpow2.f32 %v1607_v55  ;;  %v1091_v21 = vadd.f32 1.0, %v1962_v31 }
 0x624   :  { %v1964_v19 = vpop.eup %1963 }
 0x625   :  { %v1089_v42 = vadd.f32 1.0, %v1964_v19  ;;  %v2870_v19 = vld [vmem:[#allocation7_spill] sm:$0xff] }
 0x62c   :  { %v1966_v20 = vpop.eup %1965 }
 0x62d   :  { %v1093_v23 = vadd.f32 1.0, %v1966_v20  ;;  %v1968_v35 = vpop.eup %1967 }
 0x62e   :  { %v1970_v56 = vpop.eup %1969  ;;  %v1092_v14 = vadd.f32 1.0, %v1968_v35  ;;  %v2871_v35 = vld [vmem:[#allocation10_spill] sm:$0xff] }
 0x62f   :  { %1973 = vrcp.f32 %v1093_v23  ;;  %v1090_v25 = vadd.f32 1.0, %v1970_v56 }
 0x630   :  { %v1972_v61 = vpop.eup %1971  ;;  %1975 = vpow2.f32 %v1608_v7 }
 0x631   :  { %1977 = vrcp.f32 %v1091_v21  ;;  %v1094_v51 = vadd.f32 1.0, %v1972_v61  ;;  %v2872_v61 = vld [vmem:[#allocation29_spill] sm:$0xff] }
 0x632   :  { %1979 = vrcp.f32 %v1089_v42 }
 0x633   :  { %1981 = vrcp.f32 %v1094_v51 }
 0x634   :  { %1983 = vpow2.f32 %v1609_v28 }
 0x635   :  { %1985 = vrcp.f32 %v1092_v14 }
 0x636   :  { %1987 = vrcp.f32 %v1090_v25 }
 0x63c   :  { %v1974_v45 = vpop.eup %1973 }
 0x63d   :  { %v1976_v3 = vpop.eup %1975  ;;  %v1113_v11 = vmul.f32 2.0, %v1974_v45 }
 0x63e   :  { %v1978_v8 = vpop.eup %1977  ;;  %v1095_v13 = vadd.f32 1.0, %v1976_v3  ;;  %v2873_v3 = vld [vmem:[#allocation30_spill] sm:$0xff] }
 0x63f   :  { %v1980_v46 = vpop.eup %1979  ;;  %v1610_v22 = vadd.f32 -1.0, %v1113_v11  ;;  %v1117_v50 = vmul.f32 %v1978_v8, %v2716_v17 }
 0x640   :  { %v1982_v34 = vpop.eup %1981  ;;  %1989 = vrcp.f32 %v1095_v13 }
 0x641   :  { %v1984_v12 = vpop.eup %1983  ;;  %v1119_v18 = vmul.f32 %v1980_v46, %v1610_v22  ;;  %v1114_v29 = vmul.f32 2.0, %v1982_v34 }
 0x642   :  { %v1986_v52 = vpop.eup %1985  ;;  %v1096_v38 = vadd.f32 1.0, %v1984_v12 }
 0x643   :  { %v2747_v32 = vadd.f32 %v1119_v18, %v1117_v50  ;;  %v1611_v53 = vadd.f32 -1.0, %v1114_v29  ;;  %v1988_v9 = vpop.eup %1987  ;;  %v1118_v36 = vmul.f32 %v1986_v52, %v2720_v0 }
 0x645   :  { %1991 = vtanh.f32 %v2747_v32  ;;  %v1120_v5 = vmul.f32 %v1988_v9, %v1611_v53 }
 0x646   :  { %1993 = vrcp.f32 %v1096_v38 }
 0x647   :  { %v2751_v26 = vadd.f32 %v1120_v5, %v1118_v36 }
 0x649   :  { %1995 = vtanh.f32 %v2751_v26 }
 0x64d   :  { %v1990_v17 = vpop.eup %1989 }
 0x652   :  { %v1992_v6 = vpop.eup %1991 }
 0x653   :  { %v1125_v63 = vmul.f32 %v1992_v6, %v1990_v17  ;;  %v1994_v43 = vpop.eup %1993 }
 0x655   :  { %v2756_v41 = vsel %vm1127_vm6, %v1125_v63, %v2725_v48 }
 0x656   :  { %v1996_v15 = vpop.eup %1995 }
 0x657   :  { %v1126_v33 = vmul.f32 %v1996_v15, %v1994_v43 }
 0x659   :  { %v2759_v57 = vsel %vm1127_vm6, %v1126_v33, %v2728_v59  ;;  %v1151_v0 = vpack.c.bf16 %v1126_v33, %v1125_v63 }
 0x65b   :  { %1745 = vmatprep.subr.bf16.mxu0 %v1151_v0 }
 0x65c   :  { %1746 = vmatpush3.bf16.msra.mxu0 %v1151_v0 }
 0x65f   :  { %1748 = vmatmul.mubr.msk.bf16.vlgmr.msra.gmra.mxu0 %vm179_vm0, %v2682_v37 }
 0x660   :  { %1751 = vmatprep.mubr.msk.bf16.mxu0 %vm179_vm0, %v2689_v60 }
 0x667   :  { %1752 = vmatmul.mubr.msk.bf16.gmra.mxu0 %vm179_vm0, %v2696_v47 }
 0x71f   :  { %v1749_v54 = vpop.f32.mrf.mxu0 }
 0x720   :  { %v1219_v16 = vadd.f32 %v1749_v54, %v2866_v39 }
 0x721   :  { %v1186_v48 = vpop.f32.mrf.mxu0 }
 0x722   :  { %v1217_v59 = vadd.f32 %v1186_v48, %v2867_v2  ;;  %v1619_v30 = vmul.f32 -1.442695, %v1219_v16 }
 0x723   :  { %v1750_v44 = vpop.f32.mrf.mxu0 }
 0x724   :  { %v1220_v1 = vadd.f32 %v1750_v44, %v2868_v4  ;;  %v1617_v55 = vmul.f32 -1.442695, %v1217_v59  ;;  %1997 = vpow2.f32 %v1619_v30 }
 0x725   :  { %v1189_v49 = vpop.f32.mrf.mxu0 }
 0x726   :  { %v1218_v10 = vadd.f32 %v1189_v49, %v2869_v58  ;;  %v1620_v62 = vmul.f32 -1.442695, %v1220_v1  ;;  %1999 = vpow2.f32 %v1617_v55 }
 0x727   :  { %v1753_v27 = vpop.f32.mrf.mxu0 }
 0x728   :  { %v1618_v21 = vmul.f32 -1.442695, %v1218_v10  ;;  %v1223_v28 = vadd.f32 %v1753_v27, %v2872_v61 }
 0x729   :  { %v1202_v31 = vpop.f32.mrf.mxu0 }
 0x72a   :  { %v1221_v20 = vadd.f32 %v1202_v31, %v2870_v19  ;;  %v1623_v45 = vmul.f32 -1.442695, %v1223_v28  ;;  %v2096_v31 = vmov 0.0   ;;  %v2878_v28 = vld [vmem:[#allocation11_spill] sm:$0xff] }
 0x72b   :  { %v1754_v7 = vpop.f32.mrf.mxu0  ;;  %1765 = vmatprep.subr.bf16.mxu0 %v2096_v31  ;;  %1767 = vmatprep.mubr.msk.bf16.mxu0 %vm2097_vm8, %v2096_v31 }
 0x72c   :  { %v1621_v24 = vmul.f32 -1.442695, %v1221_v20  ;;  %v1224_v11 = vadd.f32 %v1754_v7, %v2873_v3  ;;  %v2874_v20 = vld [vmem:[#allocation22_spill] sm:$0xff] }
 0x72d   :  { %v1205_v23 = vpop.f32.mrf.mxu0 }
 0x72e   :  { %2001 = vpow2.f32 %v1621_v24  ;;  %v1222_v42 = vadd.f32 %v1205_v23, %v2871_v35  ;;  %v1624_v50 = vmul.f32 -1.442695, %v1224_v11  ;;  %v2876_v35 = vld [vmem:[#allocation23_spill] sm:$0xff] }
 0x72f   :  { %2003 = vpow2.f32 %v1620_v62  ;;  %v2875_v62 = vld [vmem:[#allocation17_spill] sm:$0xff] }
 0x730   :  { %v1622_v56 = vmul.f32 -1.442695, %v1222_v42  ;;  %2005 = vpow2.f32 %v1618_v21 }
 0x731   :  { %v1998_v14 = vpop.eup %1997 }
 0x732   :  { %2007 = vpow2.f32 %v1622_v56  ;;  %v1251_v8 = vadd.f32 1.0, %v1998_v14  ;;  %v2877_v56 = vld [vmem:[#allocation24_spill] sm:$0xff] }
 0x733   :  { %v2000_v51 = vpop.eup %1999 }
 0x734   :  { %v1249_v34 = vadd.f32 1.0, %v2000_v51 }
 0x73b   :  { %v2002_v25 = vpop.eup %2001 }
 0x73c   :  { %v1253_v46 = vadd.f32 1.0, %v2002_v25  ;;  %v2004_v22 = vpop.eup %2003 }
 0x73d   :  { %v2006_v13 = vpop.eup %2005  ;;  %v1252_v18 = vadd.f32 1.0, %v2004_v22 }
 0x73e   :  { %2009 = vrcp.f32 %v1253_v46  ;;  %v1250_v52 = vadd.f32 1.0, %v2006_v13 }
 0x73f   :  { %v2008_v12 = vpop.eup %2007  ;;  %2011 = vpow2.f32 %v1623_v45 }
 0x740   :  { %2013 = vrcp.f32 %v1251_v8  ;;  %v1254_v29 = vadd.f32 1.0, %v2008_v12  ;;  %v2879_v8 = vld [vmem:[#allocation33_spill] sm:$0xff] }
 0x741   :  { %2015 = vrcp.f32 %v1249_v34  ;;  %v2880_v34 = vld [vmem:[#allocation31_spill] sm:$0xff] }
 0x742   :  { %2017 = vrcp.f32 %v1254_v29 }
 0x743   :  { %2019 = vpow2.f32 %v1624_v50 }
 0x744   :  { %2021 = vrcp.f32 %v1252_v18 }
 0x745   :  { %2023 = vrcp.f32 %v1250_v52  ;;  %v2881_v52 = vld [vmem:[#allocation32_spill] sm:$0xff] }
 0x74b   :  { %v2010_v53 = vpop.eup %2009 }
 0x74c   :  { %v2012_v9 = vpop.eup %2011  ;;  %v1273_v38 = vmul.f32 2.0, %v2010_v53 }
 0x74d   :  { %v2014_v36 = vpop.eup %2013  ;;  %v1255_v63 = vadd.f32 1.0, %v2012_v9 }
 0x74e   :  { %v2016_v5 = vpop.eup %2015  ;;  %v1625_v17 = vadd.f32 -1.0, %v1273_v38  ;;  %v1277_v15 = vmul.f32 %v2014_v36, %v2747_v32 }
 0x74f   :  { %v2018_v6 = vpop.eup %2017  ;;  %2025 = vrcp.f32 %v1255_v63 }
 0x750   :  { %v2020_v43 = vpop.eup %2019  ;;  %v1279_v33 = vmul.f32 %v2016_v5, %v1625_v17  ;;  %v1274_v0 = vmul.f32 2.0, %v2018_v6 }
 0x751   :  { %v2022_v54 = vpop.eup %2021  ;;  %v1256_v16 = vadd.f32 1.0, %v2020_v43 }
 0x752   :  { %v2776_v48 = vadd.f32 %v1279_v33, %v1277_v15  ;;  %v1626_v44 = vadd.f32 -1.0, %v1274_v0  ;;  %v2024_v39 = vpop.eup %2023  ;;  %v1278_v2 = vmul.f32 %v2022_v54, %v2751_v26 }
 0x754   :  { %2027 = vtanh.f32 %v2776_v48  ;;  %v1280_v59 = vmul.f32 %v2024_v39, %v1626_v44 }
 0x755   :  { %2029 = vrcp.f32 %v1256_v16 }
 0x756   :  { %v2780_v49 = vadd.f32 %v1280_v59, %v1278_v2 }
 0x758   :  { %2031 = vtanh.f32 %v2780_v49 }
 0x75c   :  { %v2026_v32 = vpop.eup %2025 }
 0x761   :  { %v2028_v27 = vpop.eup %2027 }
 0x762   :  { %v1285_v30 = vmul.f32 %v2028_v27, %v2026_v32  ;;  %v2030_v4 = vpop.eup %2029 }
 0x764   :  { %v2785_v1 = vsel %vm1287_vm7, %v1285_v30, %v2756_v41 }
 0x765   :  { %v2032_v55 = vpop.eup %2031 }
 0x766   :  { %v1286_v58 = vmul.f32 %v2032_v55, %v2030_v4 }
 0x768   :  { %v2788_v10 = vsel %vm1287_vm7, %v1286_v58, %v2759_v57  ;;  %v1311_v26 = vpack.c.bf16 %v1286_v58, %v1285_v30 }
 0x76a   :  { %1755 = vmatprep.subr.bf16.mxu1 %v1311_v26 }
 0x76b   :  { %1756 = vmatpush3.bf16.msra.mxu1 %v1311_v26 }
 0x76e   :  { %1758 = vmatmul.mubr.msk.bf16.vlgmr.msra.gmra.mxu1 %vm179_vm0, %v2682_v37 }
 0x76f   :  { %1761 = vmatprep.mubr.msk.bf16.mxu1 %vm179_vm0, %v2689_v60 }
 0x776   :  { %1762 = vmatmul.mubr.msk.bf16.gmra.mxu1 %vm179_vm0, %v2696_v47 }
 0x82e   :  { %v1759_v41 = vpop.f32.mrf.mxu1 }
 0x82f   :  { %v1379_v7 = vadd.f32 %v1759_v41, %v2874_v20 }
 0x830   :  { %v1346_v19 = vpop.f32.mrf.mxu1 }
 0x831   :  { %v1377_v24 = vadd.f32 %v1346_v19, %v2875_v62  ;;  %v1634_v37 = vmul.f32 -1.442695, %v1379_v7 }
 0x832   :  { %v1760_v57 = vpop.f32.mrf.mxu1 }
 0x833   :  { %v1380_v42 = vadd.f32 %v1760_v57, %v2876_v35  ;;  %v1632_v60 = vmul.f32 -1.442695, %v1377_v24  ;;  %2033 = vpow2.f32 %v1634_v37 }
 0x834   :  { %v1349_v21 = vpop.f32.mrf.mxu1 }
 0x835   :  { %v1378_v61 = vadd.f32 %v1349_v21, %v2877_v56  ;;  %v1635_v25 = vmul.f32 -1.442695, %v1380_v42  ;;  %2035 = vpow2.f32 %v1632_v60  ;;  %v1456_v56 = vpop.permute.xlu0 %1455 }
 0x836   :  { %v1763_v23 = vpop.f32.mrf.mxu1 }
 0x837   :  { %v1633_v3 = vmul.f32 -1.442695, %v1378_v61  ;;  %v1383_v13 = vadd.f32 %v1763_v23, %v2880_v34 }
 0x838   :  { %v1362_v47 = vpop.f32.mrf.mxu1 }
 0x839   :  { %v1381_v14 = vadd.f32 %v1362_v47, %v2878_v28  ;;  %v1638_v29 = vmul.f32 -1.442695, %v1383_v13 }
 0x83a   :  { %v1764_v51 = vpop.f32.mrf.mxu1 }
 0x83b   :  { %v1636_v45 = vmul.f32 -1.442695, %v1381_v14  ;;  %v1384_v53 = vadd.f32 %v1764_v51, %v2881_v52 }
 0x83c   :  { %v1365_v11 = vpop.f32.mrf.mxu1 }
 0x83d   :  { %2037 = vpow2.f32 %v1636_v45  ;;  %v1382_v46 = vadd.f32 %v1365_v11, %v2879_v8  ;;  %v1639_v63 = vmul.f32 -1.442695, %v1384_v53 }
 0x83e   :  { %2039 = vpow2.f32 %v1635_v25 }
 0x83f   :  { %v1637_v22 = vmul.f32 -1.442695, %v1382_v46  ;;  %2041 = vpow2.f32 %v1633_v3 }
 0x840   :  { %v2034_v12 = vpop.eup %2033 }
 0x841   :  { %2043 = vpow2.f32 %v1637_v22  ;;  %v1411_v9 = vadd.f32 1.0, %v2034_v12 }
 0x842   :  { %v2036_v50 = vpop.eup %2035 }
 0x843   :  { %v1409_v5 = vadd.f32 1.0, %v2036_v50 }
 0x84a   :  { %v2038_v18 = vpop.eup %2037 }
 0x84b   :  { %v1413_v38 = vadd.f32 1.0, %v2038_v18  ;;  %v2040_v36 = vpop.eup %2039 }
 0x84c   :  { %v2042_v17 = vpop.eup %2041  ;;  %v1412_v43 = vadd.f32 1.0, %v2040_v36 }
 0x84d   :  { %2045 = vrcp.f32 %v1413_v38  ;;  %v1410_v33 = vadd.f32 1.0, %v2042_v17 }
 0x84e   :  { %v2044_v6 = vpop.eup %2043  ;;  %2047 = vpow2.f32 %v1638_v29 }
 0x84f   :  { %2049 = vrcp.f32 %v1411_v9  ;;  %v1414_v15 = vadd.f32 1.0, %v2044_v6 }
 0x850   :  { %2051 = vrcp.f32 %v1409_v5 }
 0x851   :  { %2053 = vrcp.f32 %v1414_v15 }
 0x852   :  { %2055 = vpow2.f32 %v1639_v63 }
 0x853   :  { %2057 = vrcp.f32 %v1412_v43 }
 0x854   :  { %2059 = vrcp.f32 %v1410_v33 }
 0x85a   :  { %v2046_v0 = vpop.eup %2045 }
 0x85b   :  { %v2048_v54 = vpop.eup %2047  ;;  %v1433_v44 = vmul.f32 2.0, %v2046_v0 }
 0x85c   :  { %v2050_v39 = vpop.eup %2049  ;;  %v1415_v32 = vadd.f32 1.0, %v2048_v54 }
 0x85d   :  { %v2052_v16 = vpop.eup %2051  ;;  %v1640_v2 = vadd.f32 -1.0, %v1433_v44  ;;  %v1437_v30 = vmul.f32 %v2050_v39, %v2776_v48 }
 0x85e   :  { %v2054_v59 = vpop.eup %2053  ;;  %2061 = vrcp.f32 %v1415_v32 }
 0x85f   :  { %v2056_v27 = vpop.eup %2055  ;;  %v1439_v4 = vmul.f32 %v2052_v16, %v1640_v2  ;;  %v1434_v55 = vmul.f32 2.0, %v2054_v59 }
 0x860   :  { %v2058_v58 = vpop.eup %2057  ;;  %v1416_v19 = vadd.f32 1.0, %v2056_v27 }
 0x861   :  { %v1441_v26 = vadd.f32 %v1439_v4, %v1437_v30  ;;  %v1641_v31 = vadd.f32 -1.0, %v1434_v55  ;;  %v2060_v41 = vpop.eup %2059  ;;  %v1438_v57 = vmul.f32 %v2058_v58, %v2780_v49  ;;  %v1450_v49 = vld [vmem:[%s2821_s5] sm:$0x1] }
 0x863   :  { %2063 = vtanh.f32 %v1441_v26  ;;  %v1440_v20 = vmul.f32 %v2060_v41, %v1641_v31 }
 0x864   :  { %2065 = vrcp.f32 %v1416_v19 }
 0x865   :  { %v1442_v7 = vadd.f32 %v1440_v20, %v1438_v57 }
 0x867   :  { %2067 = vtanh.f32 %v1442_v7 }
 0x86b   :  { %v2062_v62 = vpop.eup %2061 }
 0x870   :  { %v2064_v24 = vpop.eup %2063 }
 0x871   :  { %v1445_v48 = vmul.f32 %v2064_v24, %v2062_v62  ;;  %v2066_v21 = vpop.eup %2065 }
 0x873   :  { %v1448_v23 = vsel %vm1447_vm9, %v1445_v48, %v2785_v1 }
 0x874   :  { %v2068_v37 = vpop.eup %2067 }
 0x875   :  { %v1446_v35 = vmul.f32 %v2068_v37, %v2066_v21 }
 0x877   :  { %v1449_v42 = vsel %vm1447_vm9, %v1446_v35, %v2788_v10 }
 0x878   :  { %v1451_v60 = vpack.c.bf16 %v1449_v42, %v1448_v23 }
 0x87a   :  { %1766 = vmatpush3.bf16.msra.mxu0 %v1451_v60 }
 0x87d   :  { %1768 = vmatmul.mubr.msk.bf16.vlgmr.msra.gmra.mxu0 %vm179_vm0, %v1450_v49 }
 0x93d   :  { %v1495_v40 = vpop.f32.mrf.mxu0 }
 0x93e   :  { %v1496_v61 = vadd.f32 %v1495_v40, %v1456_v56 }
 0x93f   :  { %v1769_v1 = vpop.f32.mrf.mxu0 }
 0x940   :  { %1502 = vst.msk [vmem:[#allocation2] sm:$0x3] %vm1501_vm10, %v1496_v61 }
 0x941   :  { %v1498_v47 = vpop.f32.mrf.mxu0 }
 0x942   :  { %2084 = shalt.err (!%p2081_p4)
}
 0x943   :  { %1512 = dma.vmem_to_hbm [thread:$0]  %s1510_s20, 32, %s2823_s7, [#allocation3]   ;;  %v1770_v10 = vpop.f32.mrf.mxu0 }
 0x944   :  { %2093 = dma.done.wait [#allocation3], 32  }
 0x945   :  { %2094 = vsyncadd [#allocation3], 4294967264 }
 0x946   :  { %1516 = vsyncpa [#allocation3], 1 }

</bundles_post_ra>
